<compile_context>
chip_gen: v7x
topology: tpu7x:2x2x1
jax: 0.10.0
libtpu: 0.0.40
codegen_flags: <defaults>
</compile_context>

<pallas_src>
import functools

import jax
import jax.numpy as jnp
from jax.experimental import pallas as pl
from jax.experimental.pallas import tpu as pltpu


def _conv_in_mish_kernel(x_ref, w_ref, p_ref, o_ref, xcat_ref,
                         *, H, W, K, C_in, Cp, eps):
    # x_ref:    (1, H, W, C_in)        bf16  unpadded input tile for this sample
    # w_ref:    (K, K*C_in, Cp)        bf16  per-kh folded conv weight (C_out padded to Cp)
    # p_ref:    (3, Cp)                f32   [bias; gamma; beta]
    # o_ref:    (1, H*W, Cp)           f32   lane-dense output (flattened spatial)
    # xcat_ref: (H+2p, W+2p, K*C_in)   f32   scratch: zero-padded, kw-unrolled patches
    pad = K // 2

    # (1) Build the kw-unrolled, zero-padded patch tensor once per sample:
    #       xcat[i, u, kw*C_in:(kw+1)*C_in] = x_same_padded[i, u - pad + kw, :]
    #     This fuses the 'same' zero padding with an im2col along kw, so the conv
    #     becomes K matmuls with contraction K*C_in (instead of K*K with C_in).
    xcat_ref[...] = jnp.zeros_like(xcat_ref)
    xf = x_ref[0].astype(jnp.float32)                       # (H, W, C_in)
    for kw in range(K):                                     # K is small; static unroll
        c0 = 2 * pad - kw
        xcat_ref[pad:pad + H, c0:c0 + W, kw * C_in:(kw + 1) * C_in] = xf

    # (2) K MXU matmuls: bf16 inputs, f32 accumulation.
    acc = jnp.zeros((H * W, Cp), dtype=jnp.float32)
    for kh in range(K):
        patch = xcat_ref[kh:kh + H, pad:pad + W, :].reshape(H * W, K * C_in)
        acc = acc + jnp.dot(patch.astype(jnp.bfloat16), w_ref[kh],
                            preferred_element_type=jnp.float32)

    acc = acc + p_ref[0:1, :]                               # conv bias

    # (3) InstanceNorm2d: per-sample, per-channel stats over H*W (biased variance), f32.
    mean = jnp.mean(acc, axis=0, keepdims=True)             # (1, Cp)
    var = jnp.mean((acc - mean) * (acc - mean), axis=0, keepdims=True)
    y = (acc - mean) * jax.lax.rsqrt(var + eps)
    y = y * p_ref[1:2, :] + p_ref[2:3, :]

    # (4) Mish with a single exp:  y * tanh(softplus(y)) = y * u/(u+2), u = t*(t+2), t = e^y.
    #     Clamp the exponent; for y >= 20 the ratio is 1.0 in f32 anyway.
    t = jnp.exp(jnp.minimum(y, 20.0))
    u = t * (t + 2.0)
    o_ref[0] = (y * (u / (u + 2.0))).astype(o_ref.dtype)


def conv_nxn_in_mish(x_nchw, weight_oihw, bias, gamma, beta, *, eps=1e-5):
    """Forward pass of ConvNxN_IN_MISH.

    x_nchw:      (N, C_in, H, W)   float32
    weight_oihw: (C_out, C_in, K, K)
    bias, gamma, beta: (C_out,)
    returns:     (N, C_out, H, W) float32
    """
    N, C_in, H, W = x_nchw.shape
    C_out, _, K, _ = weight_oihw.shape
    assert K % 2 == 1, "this implementation handles odd kernel sizes ('same' pad)"
    pad = K // 2
    Cp = ((C_out + 127) // 128) * 128                       # lane-dense output channels

    # NCHW -> NHWC; bf16 matmul inputs (halves input HBM/VMEM traffic).
    x_nhwc = jnp.transpose(x_nchw, (0, 2, 3, 1)).astype(jnp.bfloat16)

    # OIHW -> (K, K*C_in, Cp): per-kh folded weight, output channels zero-padded to Cp.
    w_hwio = jnp.transpose(weight_oihw, (2, 3, 1, 0)).astype(jnp.float32)
    w_hwio = jnp.pad(w_hwio, ((0, 0), (0, 0), (0, 0), (0, Cp - C_out)))
    w_fold = w_hwio.reshape(K, K * C_in, Cp).astype(jnp.bfloat16)

    params = jnp.stack([
        jnp.pad(bias.astype(jnp.float32), (0, Cp - C_out)),
        jnp.pad(gamma.astype(jnp.float32), (0, Cp - C_out)),
        jnp.pad(beta.astype(jnp.float32), (0, Cp - C_out)),
    ], axis=0)                                              # (3, Cp) f32

    kernel = functools.partial(_conv_in_mish_kernel, H=H, W=W, K=K,
                               C_in=C_in, Cp=Cp, eps=eps)

    out_flat = pl.pallas_call(
        kernel,
        out_shape=jax.ShapeDtypeStruct((N, H * W, Cp), jnp.float32),
        grid_spec=pltpu.PrefetchScalarGridSpec(
            num_scalar_prefetch=0,
            grid=(N,),
            in_specs=[
                pl.BlockSpec((1, H, W, C_in), lambda n: (n, 0, 0, 0)),
                pl.BlockSpec((K, K * C_in, Cp), lambda n: (0, 0, 0)),
                pl.BlockSpec((3, Cp), lambda n: (0, 0)),
            ],
            out_specs=pl.BlockSpec((1, H * W, Cp), lambda n: (n, 0, 0)),
            scratch_shapes=[
                pltpu.VMEM((H + 2 * pad, W + 2 * pad, K * C_in), jnp.float32),
            ],
        ),
        compiler_params=pltpu.CompilerParams(
            dimension_semantics=("parallel",),
            vmem_limit_bytes=32 * 1024 * 1024),
    )(x_nhwc, w_fold, params)

    out = out_flat[:, :, :C_out].reshape(N, H, W, C_out)
    return jnp.transpose(out, (0, 3, 1, 2))                 # back to NCHW


def _reference(x_nchw, weight_oihw, bias, gamma, beta, eps=1e-5, matmul_bf16=True):
    # Pure-JAX reference. With matmul_bf16=True it mirrors the kernel's precision
    # policy (bf16 conv inputs, f32 accumulation, f32 IN/Mish).
    cdt = jnp.bfloat16 if matmul_bf16 else jnp.float32
    y = jax.lax.conv_general_dilated(
        x_nchw.astype(cdt), weight_oihw.astype(cdt),
        window_strides=(1, 1), padding="SAME",
        dimension_numbers=("NCHW", "OIHW", "NCHW"),
        preferred_element_type=jnp.float32)
    y = y + bias.reshape(1, -1, 1, 1)
    mean = jnp.mean(y, axis=(2, 3), keepdims=True)
    var = jnp.mean((y - mean) ** 2, axis=(2, 3), keepdims=True)
    yn = (y - mean) * jax.lax.rsqrt(var + eps)
    yn = yn * gamma.reshape(1, -1, 1, 1) + beta.reshape(1, -1, 1, 1)
    return yn * jnp.tanh(jax.nn.softplus(yn))


if __name__ == "__main__":
    key = jax.random.PRNGKey(0)
    N, C_in, C_out, H, W, K = 2, 4, 8, 16, 16, 3

    kx, kw, kb, kg, kbe = jax.random.split(key, 5)
    x = jax.random.normal(kx, (N, C_in, H, W), dtype=jnp.float32)
    # Deterministic synthetic parameters (PyTorch-compatible shapes).
    fan_in = C_in * K * K
    bound = 1.0 / (fan_in ** 0.5)
    weight = jax.random.uniform(kw, (C_out, C_in, K, K), jnp.float32,
                                minval=-bound, maxval=bound)
    bias = jax.random.uniform(kb, (C_out,), jnp.float32,
                              minval=-bound, maxval=bound)
    gamma = jnp.ones((C_out,), jnp.float32) + 0.1 * jax.random.normal(kg, (C_out,))
    beta = 0.1 * jax.random.normal(kbe, (C_out,))

    out = conv_nxn_in_mish(x, weight, bias, gamma, beta)
    out = jax.block_until_ready(out)
    assert out.shape == (N, C_out, H, W)

    # Tight check vs. a reference using the same precision policy (bf16 matmul, f32 rest).
    ref_bf16 = _reference(x, weight, bias, gamma, beta, matmul_bf16=True)
    assert jnp.allclose(out, ref_bf16, atol=2e-4, rtol=2e-4), (
        float(jnp.max(jnp.abs(out - ref_bf16))))
    # Loose check vs. the full-f32 module semantics (bf16 conv-input rounding only).
    ref_f32 = _reference(x, weight, bias, gamma, beta, matmul_bf16=False)
    assert jnp.allclose(out, ref_f32, atol=5e-2, rtol=5e-2), (
        float(jnp.max(jnp.abs(out - ref_f32))))

    print("KERNEL_OK")
</pallas_src>

<mosaic_0001>
module attributes {stable_mosaic.version = 11 : i64} {
  func.func @_conv_in_mish_kernel(%arg0: i32, %arg1: memref<1x16x16x4xbf16, #tpu.memory_space<vmem>>, %arg2: memref<3x12x128xbf16, #tpu.memory_space<vmem>>, %arg3: memref<3x128xf32, #tpu.memory_space<vmem>>, %arg4: memref<1x256x128xf32, #tpu.memory_space<vmem>>, %arg5: memref<18x18x12xf32, #tpu.memory_space<vmem>>) attributes {dimension_semantics = [#tpu.dimension_semantics<parallel>], iteration_bounds = array<i64: 2>, scalar_prefetch = 0 : i64, scratch_operands = 1 : i64, tpu.core_type = #tpu.core_type<tc>, window_params = [{transform_indices = @transform_0, window_bounds = array<i64: 1, 16, 16, 4>}, {pipeline_mode = #tpu.pipeline_mode<synchronous>, transform_indices = @transform_1, window_bounds = array<i64: 3, 12, 128>}, {pipeline_mode = #tpu.pipeline_mode<synchronous>, transform_indices = @transform_2, window_bounds = array<i64: 3, 128>}, {transform_indices = @transform_3, window_bounds = array<i64: 1, 256, 128>}]} {
    %cst = arith.constant 0.000000e+00 : f32
    %0 = vector.broadcast %cst : f32 to vector<18x18x12xf32>
    %c0 = arith.constant 0 : index
    %c0_0 = arith.constant 0 : index
    %c0_1 = arith.constant 0 : index
    %1 = vector.load %arg5[%c0, %c0_0, %c0_1] : memref<18x18x12xf32, #tpu.memory_space<vmem>>, vector<18x18x12xf32>
    tpu.vector_store %arg5[%c0, %c0_0, %c0_1], %0 {strides = array<i32>} : memref<18x18x12xf32, #tpu.memory_space<vmem>>, vector<18x18x12xf32>,
    %c0_2 = arith.constant 0 : index
    %c0_3 = arith.constant 0 : index
    %c0_4 = arith.constant 0 : index
    %c0_5 = arith.constant 0 : index
    %2 = vector.load %arg1[%c0_2, %c0_3, %c0_4, %c0_5] : memref<1x16x16x4xbf16, #tpu.memory_space<vmem>>, vector<1x16x16x4xbf16>
    %3 = vector.shape_cast %2 : vector<1x16x16x4xbf16> to vector<16x16x4xbf16>
    %4 = arith.extf %3 : vector<16x16x4xbf16> to vector<16x16x4xf32>
    %c1 = arith.constant 1 : index
    %c2 = arith.constant 2 : index
    %c0_6 = arith.constant 0 : index
    %5 = vector.load %arg5[%c1, %c2, %c0_6] : memref<18x18x12xf32, #tpu.memory_space<vmem>>, vector<16x16x4xf32>
    tpu.vector_store %arg5[%c1, %c2, %c0_6], %4 {strides = array<i32>} : memref<18x18x12xf32, #tpu.memory_space<vmem>>, vector<16x16x4xf32>,
    %c1_7 = arith.constant 1 : index
    %c1_8 = arith.constant 1 : index
    %c4 = arith.constant 4 : index
    %6 = vector.load %arg5[%c1_7, %c1_8, %c4] : memref<18x18x12xf32, #tpu.memory_space<vmem>>, vector<16x16x4xf32>
    tpu.vector_store %arg5[%c1_7, %c1_8, %c4], %4 {strides = array<i32>} : memref<18x18x12xf32, #tpu.memory_space<vmem>>, vector<16x16x4xf32>,
    %c1_9 = arith.constant 1 : index
    %c0_10 = arith.constant 0 : index
    %c8 = arith.constant 8 : index
    %7 = vector.load %arg5[%c1_9, %c0_10, %c8] : memref<18x18x12xf32, #tpu.memory_space<vmem>>, vector<16x16x4xf32>
    tpu.vector_store %arg5[%c1_9, %c0_10, %c8], %4 {strides = array<i32>} : memref<18x18x12xf32, #tpu.memory_space<vmem>>, vector<16x16x4xf32>,
    %cst_11 = arith.constant 0.000000e+00 : f32
    %8 = vector.broadcast %cst_11 : f32 to vector<256x128xf32>
    %c0_12 = arith.constant 0 : index
    %c1_13 = arith.constant 1 : index
    %c0_14 = arith.constant 0 : index
    %9 = vector.load %arg5[%c0_12, %c1_13, %c0_14] : memref<18x18x12xf32, #tpu.memory_space<vmem>>, vector<16x16x12xf32>
    %10 = vector.shape_cast %9 : vector<16x16x12xf32> to vector<256x12xf32>
    %11 = arith.truncf %10 : vector<256x12xf32> to vector<256x12xbf16>
    %c0_15 = arith.constant 0 : index
    %c0_16 = arith.constant 0 : index
    %c0_17 = arith.constant 0 : index
    %12 = vector.load %arg2[%c0_15, %c0_16, %c0_17] : memref<3x12x128xbf16, #tpu.memory_space<vmem>>, vector<1x12x128xbf16>
    %13 = vector.shape_cast %12 : vector<1x12x128xbf16> to vector<12x128xbf16>
    %cst_18 = arith.constant dense<0.000000e+00> : vector<256x128xf32>
    %14 = tpu.matmul %11, %13, %cst_18 {dimension_numbers = #tpu.dot_dimension_numbers<[1], [0], [0], [1], [0, 0, 1, 1], [], []>} : vector<256x12xbf16>, vector<12x128xbf16>, vector<256x128xf32> -> vector<256x128xf32>
    %15 = arith.addf %8, %14 : vector<256x128xf32>
    %c1_19 = arith.constant 1 : index
    %c1_20 = arith.constant 1 : index
    %c0_21 = arith.constant 0 : index
    %16 = vector.load %arg5[%c1_19, %c1_20, %c0_21] : memref<18x18x12xf32, #tpu.memory_space<vmem>>, vector<16x16x12xf32>
    %17 = vector.shape_cast %16 : vector<16x16x12xf32> to vector<256x12xf32>
    %18 = arith.truncf %17 : vector<256x12xf32> to vector<256x12xbf16>
    %c1_22 = arith.constant 1 : index
    %c0_23 = arith.constant 0 : index
    %c0_24 = arith.constant 0 : index
    %19 = vector.load %arg2[%c1_22, %c0_23, %c0_24] : memref<3x12x128xbf16, #tpu.memory_space<vmem>>, vector<1x12x128xbf16>
    %20 = vector.shape_cast %19 : vector<1x12x128xbf16> to vector<12x128xbf16>
    %cst_25 = arith.constant dense<0.000000e+00> : vector<256x128xf32>
    %21 = tpu.matmul %18, %20, %cst_25 {dimension_numbers = #tpu.dot_dimension_numbers<[1], [0], [0], [1], [0, 0, 1, 1], [], []>} : vector<256x12xbf16>, vector<12x128xbf16>, vector<256x128xf32> -> vector<256x128xf32>
    %22 = arith.addf %15, %21 : vector<256x128xf32>
    %c2_26 = arith.constant 2 : index
    %c1_27 = arith.constant 1 : index
    %c0_28 = arith.constant 0 : index
    %23 = vector.load %arg5[%c2_26, %c1_27, %c0_28] : memref<18x18x12xf32, #tpu.memory_space<vmem>>, vector<16x16x12xf32>
    %24 = vector.shape_cast %23 : vector<16x16x12xf32> to vector<256x12xf32>
    %25 = arith.truncf %24 : vector<256x12xf32> to vector<256x12xbf16>
    %c2_29 = arith.constant 2 : index
    %c0_30 = arith.constant 0 : index
    %c0_31 = arith.constant 0 : index
    %26 = vector.load %arg2[%c2_29, %c0_30, %c0_31] : memref<3x12x128xbf16, #tpu.memory_space<vmem>>, vector<1x12x128xbf16>
    %27 = vector.shape_cast %26 : vector<1x12x128xbf16> to vector<12x128xbf16>
    %cst_32 = arith.constant dense<0.000000e+00> : vector<256x128xf32>
    %28 = tpu.matmul %25, %27, %cst_32 {dimension_numbers = #tpu.dot_dimension_numbers<[1], [0], [0], [1], [0, 0, 1, 1], [], []>} : vector<256x12xbf16>, vector<12x128xbf16>, vector<256x128xf32> -> vector<256x128xf32>
    %29 = arith.addf %22, %28 : vector<256x128xf32>
    %c0_33 = arith.constant 0 : index
    %c0_34 = arith.constant 0 : index
    %30 = vector.load %arg3[%c0_33, %c0_34] : memref<3x128xf32, #tpu.memory_space<vmem>>, vector<1x128xf32>
    %31 = vector.broadcast %30 : vector<1x128xf32> to vector<256x128xf32>
    %32 = arith.addf %29, %31 : vector<256x128xf32>
    %cst_35 = arith.constant dense<0.000000e+00> : vector<128xf32>
    %33 = vector.multi_reduction <add>, %32, %cst_35 [0] : vector<256x128xf32> to vector<128xf32>
    %34 = vector.shape_cast %33 : vector<128xf32> to vector<1x128xf32>
    %cst_36 = arith.constant 2.560000e+02 : f32
    %35 = vector.broadcast %cst_36 : f32 to vector<1x128xf32>
    %36 = arith.divf %34, %35 : vector<1x128xf32>
    %37 = vector.broadcast %36 : vector<1x128xf32> to vector<256x128xf32>
    %38 = arith.subf %32, %37 : vector<256x128xf32>
    %39 = vector.broadcast %36 : vector<1x128xf32> to vector<256x128xf32>
    %40 = arith.subf %32, %39 : vector<256x128xf32>
    %41 = arith.mulf %38, %40 : vector<256x128xf32>
    %cst_37 = arith.constant dense<0.000000e+00> : vector<128xf32>
    %42 = vector.multi_reduction <add>, %41, %cst_37 [0] : vector<256x128xf32> to vector<128xf32>
    %43 = vector.shape_cast %42 : vector<128xf32> to vector<1x128xf32>
    %cst_38 = arith.constant 2.560000e+02 : f32
    %44 = vector.broadcast %cst_38 : f32 to vector<1x128xf32>
    %45 = arith.divf %43, %44 : vector<1x128xf32>
    %46 = vector.broadcast %36 : vector<1x128xf32> to vector<256x128xf32>
    %47 = arith.subf %32, %46 : vector<256x128xf32>
    %cst_39 = arith.constant 9.99999974E-6 : f32
    %48 = vector.broadcast %cst_39 : f32 to vector<1x128xf32>
    %49 = arith.addf %45, %48 : vector<1x128xf32>
    %50 = math.rsqrt %49 : vector<1x128xf32>
    %51 = vector.broadcast %50 : vector<1x128xf32> to vector<256x128xf32>
    %52 = arith.mulf %47, %51 : vector<256x128xf32>
    %c1_40 = arith.constant 1 : index
    %c0_41 = arith.constant 0 : index
    %53 = vector.load %arg3[%c1_40, %c0_41] : memref<3x128xf32, #tpu.memory_space<vmem>>, vector<1x128xf32>
    %54 = vector.broadcast %53 : vector<1x128xf32> to vector<256x128xf32>
    %55 = arith.mulf %52, %54 : vector<256x128xf32>
    %c2_42 = arith.constant 2 : index
    %c0_43 = arith.constant 0 : index
    %56 = vector.load %arg3[%c2_42, %c0_43] : memref<3x128xf32, #tpu.memory_space<vmem>>, vector<1x128xf32>
    %57 = vector.broadcast %56 : vector<1x128xf32> to vector<256x128xf32>
    %58 = arith.addf %55, %57 : vector<256x128xf32>
    %cst_44 = arith.constant 2.000000e+01 : f32
    %59 = vector.broadcast %cst_44 : f32 to vector<256x128xf32>
    %60 = arith.minimumf %58, %59 : vector<256x128xf32>
    %61 = math.exp %60 : vector<256x128xf32>
    %cst_45 = arith.constant 2.000000e+00 : f32
    %62 = vector.broadcast %cst_45 : f32 to vector<256x128xf32>
    %63 = arith.addf %61, %62 : vector<256x128xf32>
    %64 = arith.mulf %61, %63 : vector<256x128xf32>
    %cst_46 = arith.constant 2.000000e+00 : f32
    %65 = vector.broadcast %cst_46 : f32 to vector<256x128xf32>
    %66 = arith.addf %64, %65 : vector<256x128xf32>
    %67 = arith.divf %64, %66 : vector<256x128xf32>
    %68 = arith.mulf %58, %67 : vector<256x128xf32>
    %c0_47 = arith.constant 0 : index
    %c0_48 = arith.constant 0 : index
    %c0_49 = arith.constant 0 : index
    %69 = vector.load %arg4[%c0_47, %c0_48, %c0_49] : memref<1x256x128xf32, #tpu.memory_space<vmem>>, vector<1x256x128xf32>
    %70 = vector.shape_cast %69 : vector<1x256x128xf32> to vector<256x128xf32>
    %71 = vector.shape_cast %68 : vector<256x128xf32> to vector<1x256x128xf32>
    tpu.vector_store %arg4[%c0_47, %c0_48, %c0_49], %71 {strides = array<i32>} : memref<1x256x128xf32, #tpu.memory_space<vmem>>, vector<1x256x128xf32>,
    return
  }
  func.func @transform_0(%arg0: i32) -> (i32, i32, i32, i32) {
    %c0_i32 = arith.constant 0 : i32
    %c0_i32_0 = arith.constant 0 : i32
    %c0_i32_1 = arith.constant 0 : i32
    %c0_i32_2 = arith.constant 0 : i32
    return %arg0, %c0_i32, %c0_i32_0, %c0_i32_1 : i32, i32, i32, i32
  }
  func.func @transform_1(%arg0: i32) -> (i32, i32, i32) {
    %c0_i32 = arith.constant 0 : i32
    %c0_i32_0 = arith.constant 0 : i32
    %c0_i32_1 = arith.constant 0 : i32
    %c0_i32_2 = arith.constant 0 : i32
    return %c0_i32, %c0_i32_0, %c0_i32_1 : i32, i32, i32
  }
  func.func @transform_2(%arg0: i32) -> (i32, i32) {
    %c0_i32 = arith.constant 0 : i32
    %c0_i32_0 = arith.constant 0 : i32
    %c0_i32_1 = arith.constant 0 : i32
    return %c0_i32, %c0_i32_0 : i32, i32
  }
  func.func @transform_3(%arg0: i32) -> (i32, i32, i32) {
    %c0_i32 = arith.constant 0 : i32
    %c0_i32_0 = arith.constant 0 : i32
    %c0_i32_1 = arith.constant 0 : i32
    return %arg0, %c0_i32, %c0_i32_0 : i32, i32, i32
  }
}

</mosaic_0001>

<bundles_post_ra>
// kernel: tpu_custom_call.1
= control target key start
LH: loop header
LB: loop body
LE: loop exit
PB: predicated region body
PF: predicated region fallthrough
CT: control target
= control target key end

     0   :  { %8 = vsyncpa [#allocation4], 0  ;;  %s4135_s0 = inlined_call_operand.vmem [shape: bf16[2,16,16,4], index: 0, kind: input, shape index: {}]   ;;  %s4136_s1 = inlined_call_operand.vmem [shape: bf16[3,12,128], index: 1, kind: input, shape index: {}]   ;;  %s4137_s2 = inlined_call_operand.vmem [shape: f32[3,128], index: 2, kind: input, shape index: {}]   ;;  %s4138_s3 = inlined_call_operand.hbm [shape: f32[2,256,128], index: 3, kind: output, shape index: {}]  }
   0x1   :  { %10 = vsyncpa [#allocation4 + $0x1], 0  ;;  %s2932_s12 = smov 0   ;;  %s2934_s13 = smov 0  }
   0x2   :  { %s2936_s14 = smov 0   ;;  %s2938_s15 = smov 0  }
   0x3 LB: > { %s2953_s16 = sadd.s32 4294967295, %s2905_s15   ;;  %s2133_s17 = sadd.s32 4294967294, %s2905_s15   ;;  %s2905_s15 = sphi %s2938_s15, %s4216_s15   ;;  %s2901_s14 = sphi %s2936_s14, %s4215_s14   ;;  %s2897_s13 = sphi %s2934_s13, %s4214_s13   ;;  %s2893_s12 = sphi %s2932_s12, %s4213_s12  }
   0x4   : > { %s2957_s18 = sadd.s32 1, %s2905_s15   ;;  %s91_s19 = sadd.s32 1, %s2901_s14 }
   0x5   : > { %s88_s20 = ssub.s32 %s2905_s15, %s2957_s18  ;;  %p101_p0 = scmp.ne.s32.totalorder %s2901_s14, %s2897_s13 }
   0x6   : > { %p89_p1 = scmp.eq.s32.totalorder %s88_s20, 0  ;;  %p102_p2 = scmp.eq.s32.totalorder %s2953_s16, 1 }
   0x7   : > { %p107_p3 = scmp.ne.s32.totalorder %s2897_s13, %s2893_s12  ;;  %p108_p4 = scmp.eq.s32.totalorder %s2133_s17, 1 }
   0x8   : > { %s2968_s21 = scalar_select %p89_p1, %s2901_s14, %s91_s19  }
   0x9   : > { %p2970_p5 = por %p102_p2, %p101_p0  ;;  %p2974_p6 = por %p108_p4, %p107_p3 }
   0xa   : > { %p2136_p7 = scmp.ge.s32.totalorder %s2905_s15, 1  ;;  %p140_p8 = scmp.lt.s32.totalorder %s2905_s15, 3 }
   0xc   : > { %p141_p9 = pnand %p2136_p7, %p140_p8 }
   0xe   : > { %144 = sbr.rel (%p141_p9) target bundleno = 713 (0x2c9), region = 32 }
  0x15   : > { %p164_p10 = scmp.lt.s32.totalorder %s2953_s16, 1  ;;  %vm170_vm0 = vcmask 97280   ;;  %vm173_vm1 = vcmask 91136   ;;  %v2907_v0 = vmov 0.0   ;;  %v3046_v1 = vld [vmem:[%s4136_s1] sm:$0x3f]  }
  0x16   : > { %175 = vst.msk [vmem:[#allocation2 + $0x18] sm:$0xff] %vm170_vm0, %v2907_v0  ;;  %176 = vst.msk [vmem:[#allocation2 + $0x20] sm:$0xff] %vm170_vm0, %v2907_v0  ;;  %vm291_vm2 = vcmask 31744   ;;  %vm768_vm3 = vcmask 1045504   ;;  %s2908_s4 = smov 8   ;;  %s2909_s5 = smov 4  }
  0x17   : > { %177 = vst.msk [vmem:[#allocation2 + $0x28] sm:$0x3] %vm173_vm1, %v2907_v0  ;;  %174 = vst.msk [vmem:[#allocation2 + $0x10] sm:$0x3] %vm173_vm1, %v2907_v0  ;;  %s165_s24 = scalar_select %p164_p10, %s2953_s16, 1  ;;  %2504 = vmatprep.subr.msk.bf16.mxu0 %vm768_vm3, %v3046_v1  ;;  %v3192_v60 = vsel %vm768_vm3, %v3046_v1, 0 }
  0x18   : > { %171 = vst.msk [vmem:[#allocation2] sm:$0xff] %vm170_vm0, %v2907_v0  ;;  %172 = vst.msk [vmem:[#allocation2 + $0x8] sm:$0xff] %vm170_vm0, %v2907_v0  ;;  %v3083_v24 = vld [vmem:[%s4136_s1 + $0x8] sm:$0x3f]   ;;  %v2712_v51 = vld [vmem:[%s4136_s1 + $0x10] sm:$0x3f]   ;;  %2370 = vmatpush3.bf16.msra.mxu0 %v3192_v60 }
  0x19   : > { %178 = vst.msk [vmem:[#allocation2 + $0x30] sm:$0xff] %vm170_vm0, %v2907_v0  ;;  %179 = vst.msk [vmem:[#allocation2 + $0x38] sm:$0xff] %vm170_vm0, %v2907_v0  ;;  %s2203_s25 = sshll.u32 %s165_s24, 7  ;;  %2503 = vmatprep.subr.msk.bf16.mxu1 %vm768_vm3, %v3083_v24  ;;  %v770_v62 = vsel %vm768_vm3, %v3083_v24, 0  ;;  %v3197_v63 = vsel %vm768_vm3, %v2712_v51, 0  ;;  %2506 = vmatprep.subr.msk.bf16.mxu0 %vm768_vm3, %v2712_v51  ;;  %vm452_vm4 = vcmask 64544  }
  0x1a   : > { %180 = vst.msk [vmem:[#allocation2 + $0x40] sm:$0x3] %vm173_vm1, %v2907_v0  ;;  %183 = vst.msk [vmem:[#allocation2 + $0x58] sm:$0x3] %vm173_vm1, %v2907_v0  ;;  %s3041_s28 = scalar_lea.vmem %s4135_s0, %s2203_s25  ;;  %2336 = vmatpush3.bf16.msra.mxu1 %v770_v62  ;;  %vm581_vm5 = vcmask 97344   ;;  %s161_s25 = sand.u32 1, %s2897_s13  }
  0x1b   : > { %181 = vst.msk [vmem:[#allocation2 + $0x48] sm:$0xff] %vm170_vm0, %v2907_v0  ;;  %182 = vst.msk [vmem:[#allocation2 + $0x50] sm:$0xff] %vm170_vm0, %v2907_v0  ;;  %v2206_v2 = vld [vmem:[%s3041_s28] sm:$0xff]   ;;  %v2269_v3 = vld [vmem:[%s3041_s28 + $0x8] sm:$0xff]   ;;  %2505 = vmatprep.subr.msk.bf16.mxu1 %vm768_vm3, %v3046_v1  ;;  %s2137_s26 = sshll.u32 %s161_s25, 8  ;;  %s4093_s6 = scalar_lea.sflag [#allocation4], %s161_s25 }
  0x1c   : > { %184 = vst.msk [vmem:[#allocation2 + $0x60] sm:$0xff] %vm170_vm0, %v2907_v0  ;;  %185 = vst.msk [vmem:[#allocation2 + $0x68] sm:$0xff] %vm170_vm0, %v2907_v0  ;;  %v2271_v4 = vld [vmem:[%s3041_s28 + $0x18] sm:$0xff]   ;;  %v2207_v5 = vunpack.c.l.bf16 %v2206_v2  ;;  %v2208_v6 = vunpack.c.h.bf16 %v2206_v2  ;;  %v2211_v7 = vunpack.c.l.bf16 %v2269_v3  ;;  %v2212_v8 = vunpack.c.h.bf16 %v2269_v3  ;;  %v2270_v9 = vld [vmem:[%s3041_s28 + $0x10] sm:$0xff]   ;;  %s3865_s27 = scalar_lea.vmem [#allocation3], %s2137_s26  ;;  %s2910_s8 = smov [#allocation3]  }
  0x1d   : > { %186 = vst.msk [vmem:[#allocation2 + $0x70] sm:$0x3] %vm173_vm1, %v2907_v0  ;;  %189 = vst.msk [vmem:[#allocation2 + $0x88] sm:$0x3] %vm173_vm1, %v2907_v0  ;;  %v2219_v10 = vunpack.c.l.bf16 %v2271_v4  ;;  %v2220_v11 = vunpack.c.h.bf16 %v2271_v4  ;;  %v2215_v12 = vunpack.c.l.bf16 %v2270_v9  ;;  %v2216_v13 = vunpack.c.h.bf16 %v2270_v9  ;;  %v3055_v14 = vld [vmem:[%s3041_s28 + $0x28] sm:$0xff]   ;;  %v3058_v15 = vld [vmem:[%s3041_s28 + $0x20] sm:$0xff]  }
  0x1e   : > { %187 = vst.msk [vmem:[#allocation2 + $0x78] sm:$0xff] %vm170_vm0, %v2907_v0  ;;  %188 = vst.msk [vmem:[#allocation2 + $0x80] sm:$0xff] %vm170_vm0, %v2907_v0  ;;  %v2560_v16 = vpack.i.bf16 %v2208_v6, %v2207_v5  ;;  %v3061_v17 = vld [vmem:[%s3041_s28 + $0x38] sm:$0xff]   ;;  %v3064_v18 = vld [vmem:[%s3041_s28 + $0x30] sm:$0xff]   ;;  %v2565_v19 = vpack.i.bf16 %v2212_v8, %v2211_v7  ;;  %v2227_v20 = vunpack.c.l.bf16 %v3055_v14  ;;  %v2228_v21 = vunpack.c.h.bf16 %v3055_v14  ;;  %s2071_s29 = sshll.u32 %s3865_s27, 4  ;;  %s2847_s9 = sshll.u32 %s2910_s8, 4  ;;  %s4087_s29 = int_to_ptr.vmem [resolvable:$true] %s2071_s29  ;;  %s2848_s9 = int_to_ptr.vmem [resolvable:$false] %s2847_s9 }
  0x1f   : > { %190 = vst.msk [vmem:[#allocation2 + $0x90] sm:$0xff] %vm170_vm0, %v2907_v0  ;;  %191 = vst.msk [vmem:[#allocation2 + $0x98] sm:$0xff] %vm170_vm0, %v2907_v0  ;;  %v2223_v22 = vunpack.c.l.bf16 %v3058_v15  ;;  %v2224_v23 = vunpack.c.h.bf16 %v3058_v15  ;;  %v2235_v25 = vunpack.c.l.bf16 %v3061_v17  ;;  %v2236_v26 = vunpack.c.h.bf16 %v3061_v17  ;;  %v3090_v29 = vld [vmem:[%s3041_s28 + $0x48] sm:$0xff]   ;;  %v3093_v30 = vld [vmem:[%s3041_s28 + $0x40] sm:$0xff]   ;;  %s2843_s7 = scalar_lea.vmem %s4087_s29, 4096  ;;  %s2849_s10 = scalar_lea.vmem %s2848_s9, 8192 }
  0x20   : > { %192 = vst.msk [vmem:[#allocation2 + $0xa0] sm:$0x3] %vm173_vm1, %v2907_v0  ;;  %195 = vst.msk [vmem:[#allocation2 + $0xb8] sm:$0x3] %vm173_vm1, %v2907_v0  ;;  %2561 = vrot.lane.b32.xlu1 %v2560_v16, %s2908_s4  ;;  %2551 = vrot.lane.b32.xlu0 %v2560_v16, %s2909_s5  ;;  %v2231_v27 = vunpack.c.l.bf16 %v3064_v18  ;;  %v2232_v28 = vunpack.c.h.bf16 %v3064_v18  ;;  %v3096_v31 = vld [vmem:[%s3041_s28 + $0x58] sm:$0xff]   ;;  %v3099_v32 = vld [vmem:[%s3041_s28 + $0x50] sm:$0xff]   ;;  %v2575_v33 = vpack.i.bf16 %v2220_v11, %v2219_v10  ;;  %v2243_v35 = vunpack.c.l.bf16 %v3090_v29  ;;  %p2844_p11 = scmp.ne.s32.totalorder %s4087_s29, %s2843_s7  ;;  %p2850_p0 = scmp.lt.s32.totalorder %s4087_s29, %s2848_s9 }
  0x21   : > { %193 = vst.msk [vmem:[#allocation2 + $0xa8] sm:$0xff] %vm170_vm0, %v2907_v0  ;;  %194 = vst.msk [vmem:[#allocation2 + $0xb0] sm:$0xff] %vm170_vm0, %v2907_v0  ;;  %v2570_v34 = vpack.i.bf16 %v2216_v13, %v2215_v12  ;;  %v2244_v36 = vunpack.c.h.bf16 %v3090_v29  ;;  %v2239_v37 = vunpack.c.l.bf16 %v3093_v30  ;;  %v2240_v38 = vunpack.c.h.bf16 %v3093_v30  ;;  %v3132_v43 = vld [vmem:[%s3041_s28 + $0x68] sm:$0xff]   ;;  %v3135_v44 = vld [vmem:[%s3041_s28 + $0x60] sm:$0xff]   ;;  %p2851_p1 = scmp.lt.s32.totalorder %s2849_s10, %s2843_s7 }
  0x22   : > { %196 = vst.msk [vmem:[#allocation2 + $0xc0] sm:$0xff] %vm170_vm0, %v2907_v0  ;;  %197 = vst.msk [vmem:[#allocation2 + $0xc8] sm:$0xff] %vm170_vm0, %v2907_v0  ;;  %v2251_v39 = vunpack.c.l.bf16 %v3096_v31  ;;  %v2252_v40 = vunpack.c.h.bf16 %v3096_v31  ;;  %v2247_v41 = vunpack.c.l.bf16 %v3099_v32  ;;  %v2248_v42 = vunpack.c.h.bf16 %v3099_v32  ;;  %v3138_v45 = vld [vmem:[%s3041_s28 + $0x78] sm:$0xff]   ;;  %v3141_v46 = vld [vmem:[%s3041_s28 + $0x70] sm:$0xff]   ;;  %s2204_s28 = sshll.u32 %s2953_s16, 12  ;;  %p2845_p12 = pnand %p2844_p11, %p2970_p5 }
  0x23   : > { %198 = vst.msk [vmem:[#allocation2 + $0xd0] sm:$0x3] %vm173_vm1, %v2907_v0  ;;  %201 = vst.msk [vmem:[#allocation2 + $0xe8] sm:$0x3] %vm173_vm1, %v2907_v0  ;;  %v2259_v47 = vunpack.c.l.bf16 %v3132_v43  ;;  %v2260_v48 = vunpack.c.h.bf16 %v3132_v43  ;;  %v2255_v49 = vunpack.c.l.bf16 %v3135_v44  ;;  %v2256_v50 = vunpack.c.h.bf16 %v3135_v44  ;;  %v614_v56 = vld [vmem:[#allocation2 + $0x1] sm:$0xff]  ;;  %v615_v57 = vld [vmem:[#allocation2 + $0x9] sm:$0xff]  ;;  %p2852_p2 = por %p2851_p1, %p2850_p0 }
  0x24   : > { %199 = vst.msk [vmem:[#allocation2 + $0xd8] sm:$0xff] %vm170_vm0, %v2907_v0  ;;  %200 = vst.msk [vmem:[#allocation2 + $0xe0] sm:$0xff] %vm170_vm0, %v2907_v0  ;;  %2566 = vrot.lane.b32.xlu1 %v2565_v19, %s2908_s4  ;;  %2556 = vrot.lane.b32.xlu0 %v2565_v19, %s2909_s5  ;;  %v2267_v52 = vunpack.c.l.bf16 %v3138_v45  ;;  %v2268_v53 = vunpack.c.h.bf16 %v3138_v45  ;;  %v2263_v54 = vunpack.c.l.bf16 %v3141_v46  ;;  %v2264_v55 = vunpack.c.h.bf16 %v3141_v46  ;;  %p2846_p13 = pneg %p2845_p12 }
  0x25   : > { %202 = vst.msk [vmem:[#allocation2 + $0xf0] sm:$0xff] %vm170_vm0, %v2907_v0  ;;  %203 = vst.msk [vmem:[#allocation2 + $0xf8] sm:$0xff] %vm170_vm0, %v2907_v0  ;;  %v2595_v58 = vpack.i.bf16 %v2228_v21, %v2227_v20  ;;  %v2590_v59 = vpack.i.bf16 %v2224_v23, %v2223_v22  ;;  %v646_v61 = vpack.c.bf16 %v615_v57, %v614_v56 }
  0x26   : > { %204 = vst.msk [vmem:[#allocation2 + $0x100] sm:$0x3] %vm173_vm1, %v2907_v0  ;;  %207 = vst.msk [vmem:[#allocation2 + $0x118] sm:$0x3] %vm173_vm1, %v2907_v0  ;;  %v2610_v1 = vpack.i.bf16 %v2232_v28, %v2231_v27  ;;  %v2635_v2 = vpack.i.bf16 %v2244_v36, %v2243_v35  ;;  %v2630_v3 = vpack.i.bf16 %v2240_v38, %v2239_v37  ;;  %p2853_p3 = pnand %p2852_p2, %p2846_p13 }
  0x27   : > { %205 = vst.msk [vmem:[#allocation2 + $0x108] sm:$0xff] %vm170_vm0, %v2907_v0  ;;  %206 = vst.msk [vmem:[#allocation2 + $0x110] sm:$0xff] %vm170_vm0, %v2907_v0  ;;  %2371 = vmatprep.mubr.msk.bf16.mxu0 %vm170_vm0, %v646_v61  ;;  %v2655_v4 = vpack.i.bf16 %v2252_v40, %v2251_v39  ;;  %v2690_v9 = vpack.i.bf16 %v2264_v55, %v2263_v54 }
  0x28   : > { %208 = vst.msk [vmem:[#allocation2 + $0x120] sm:$0xff] %vm170_vm0, %v2907_v0  ;;  %209 = vst.msk [vmem:[#allocation2 + $0x128] sm:$0xff] %vm170_vm0, %v2907_v0  ;;  %2576 = vrot.lane.b32.xlu1 %v2575_v33, %s2909_s5  ;;  %2571 = vrot.lane.b32.xlu0 %v2570_v34, %s2909_s5 }
  0x29   : > { %210 = vst.msk [vmem:[#allocation2 + $0x130] sm:$0x3] %vm173_vm1, %v2907_v0  ;;  %213 = vst.msk [vmem:[#allocation2 + $0x148] sm:$0x3] %vm173_vm1, %v2907_v0 }
  0x2a   : > { %211 = vst.msk [vmem:[#allocation2 + $0x138] sm:$0xff] %vm170_vm0, %v2907_v0  ;;  %212 = vst.msk [vmem:[#allocation2 + $0x140] sm:$0xff] %vm170_vm0, %v2907_v0 }
  0x2b   : > { %214 = vst.msk [vmem:[#allocation2 + $0x150] sm:$0xff] %vm170_vm0, %v2907_v0  ;;  %215 = vst.msk [vmem:[#allocation2 + $0x158] sm:$0xff] %vm170_vm0, %v2907_v0 }
  0x2c   : > { %216 = vst.msk [vmem:[#allocation2 + $0x160] sm:$0x3] %vm173_vm1, %v2907_v0  ;;  %219 = vst.msk [vmem:[#allocation2 + $0x178] sm:$0x3] %vm173_vm1, %v2907_v0  ;;  %2586 = vrot.lane.b32.xlu1 %v2575_v33, %s2908_s4  ;;  %2581 = vrot.lane.b32.xlu0 %v2570_v34, %s2908_s4 }
  0x2d   : > { %217 = vst.msk [vmem:[#allocation2 + $0x168] sm:$0xff] %vm170_vm0, %v2907_v0  ;;  %218 = vst.msk [vmem:[#allocation2 + $0x170] sm:$0xff] %vm170_vm0, %v2907_v0 }
  0x2e   : > { %220 = vst.msk [vmem:[#allocation2 + $0x180] sm:$0xff] %vm170_vm0, %v2907_v0  ;;  %221 = vst.msk [vmem:[#allocation2 + $0x188] sm:$0xff] %vm170_vm0, %v2907_v0 }
  0x2f   : > { %222 = vst.msk [vmem:[#allocation2 + $0x190] sm:$0x3] %vm173_vm1, %v2907_v0  ;;  %225 = vst.msk [vmem:[#allocation2 + $0x1a8] sm:$0x3] %vm173_vm1, %v2907_v0 }
  0x30   : > { %223 = vst.msk [vmem:[#allocation2 + $0x198] sm:$0xff] %vm170_vm0, %v2907_v0  ;;  %224 = vst.msk [vmem:[#allocation2 + $0x1a0] sm:$0xff] %vm170_vm0, %v2907_v0  ;;  %2596 = vrot.lane.b32.xlu1 %v2595_v58, %s2909_s5  ;;  %2591 = vrot.lane.b32.xlu0 %v2590_v59, %s2909_s5  ;;  %v2615_v0 = vpack.i.bf16 %v2236_v26, %v2235_v25 }
  0x31   : > { %293 = vst.msk [vmem:[#allocation2 + $0x22] sm:$0xff] %vm291_vm2, %v2208_v6  ;;  %292 = vst.msk [vmem:[#allocation2 + $0x1a] sm:$0xff] %vm291_vm2, %v2207_v5  ;;  %v2650_v5 = vpack.i.bf16 %v2248_v42, %v2247_v41  ;;  %v2675_v6 = vpack.i.bf16 %v2260_v48, %v2259_v47 }
  0x32   : > { %294 = vst.msk [vmem:[#allocation2 + $0x32] sm:$0xff] %vm291_vm2, %v2211_v7  ;;  %295 = vst.msk [vmem:[#allocation2 + $0x3a] sm:$0xff] %vm291_vm2, %v2212_v8  ;;  %v2670_v7 = vpack.i.bf16 %v2256_v50, %v2255_v49  ;;  %v2695_v8 = vpack.i.bf16 %v2268_v53, %v2267_v52 }
  0x33   : > { %296 = vst.msk [vmem:[#allocation2 + $0x4a] sm:$0xff] %vm291_vm2, %v2215_v12  ;;  %297 = vst.msk [vmem:[#allocation2 + $0x52] sm:$0xff] %vm291_vm2, %v2216_v13 }
  0x34   : > { %298 = vst.msk [vmem:[#allocation2 + $0x62] sm:$0xff] %vm291_vm2, %v2219_v10  ;;  %299 = vst.msk [vmem:[#allocation2 + $0x6a] sm:$0xff] %vm291_vm2, %v2220_v11  ;;  %2606 = vrot.lane.b32.xlu1 %v2595_v58, %s2908_s4  ;;  %2601 = vrot.lane.b32.xlu0 %v2590_v59, %s2908_s4 }
  0x35   : > { %300 = vst.msk [vmem:[#allocation2 + $0x7a] sm:$0xff] %vm291_vm2, %v2223_v22  ;;  %301 = vst.msk [vmem:[#allocation2 + $0x82] sm:$0xff] %vm291_vm2, %v2224_v23 }
  0x36   : > { %302 = vst.msk [vmem:[#allocation2 + $0x92] sm:$0xff] %vm291_vm2, %v2227_v20  ;;  %303 = vst.msk [vmem:[#allocation2 + $0x9a] sm:$0xff] %vm291_vm2, %v2228_v21 }
  0x37   : > { %304 = vst.msk [vmem:[#allocation2 + $0xaa] sm:$0xff] %vm291_vm2, %v2231_v27  ;;  %305 = vst.msk [vmem:[#allocation2 + $0xb2] sm:$0xff] %vm291_vm2, %v2232_v28 }
  0x38   : > { %306 = vst.msk [vmem:[#allocation2 + $0xc2] sm:$0xff] %vm291_vm2, %v2235_v25  ;;  %307 = vst.msk [vmem:[#allocation2 + $0xca] sm:$0xff] %vm291_vm2, %v2236_v26  ;;  %2616 = vrot.lane.b32.xlu1 %v2615_v0, %s2909_s5  ;;  %2611 = vrot.lane.b32.xlu0 %v2610_v1, %s2909_s5 }
  0x39   : > { %308 = vst.msk [vmem:[#allocation2 + $0xda] sm:$0xff] %vm291_vm2, %v2239_v37  ;;  %309 = vst.msk [vmem:[#allocation2 + $0xe2] sm:$0xff] %vm291_vm2, %v2240_v38 }
  0x3a   : > { %310 = vst.msk [vmem:[#allocation2 + $0xf2] sm:$0xff] %vm291_vm2, %v2243_v35  ;;  %311 = vst.msk [vmem:[#allocation2 + $0xfa] sm:$0xff] %vm291_vm2, %v2244_v36 }
  0x3b   : > { %312 = vst.msk [vmem:[#allocation2 + $0x10a] sm:$0xff] %vm291_vm2, %v2247_v41  ;;  %313 = vst.msk [vmem:[#allocation2 + $0x112] sm:$0xff] %vm291_vm2, %v2248_v42 }
  0x3c   : > { %314 = vst.msk [vmem:[#allocation2 + $0x122] sm:$0xff] %vm291_vm2, %v2251_v39  ;;  %315 = vst.msk [vmem:[#allocation2 + $0x12a] sm:$0xff] %vm291_vm2, %v2252_v40  ;;  %2626 = vrot.lane.b32.xlu1 %v2615_v0, %s2908_s4  ;;  %2621 = vrot.lane.b32.xlu0 %v2610_v1, %s2908_s4 }
  0x3d   : > { %316 = vst.msk [vmem:[#allocation2 + $0x13a] sm:$0xff] %vm291_vm2, %v2255_v49  ;;  %317 = vst.msk [vmem:[#allocation2 + $0x142] sm:$0xff] %vm291_vm2, %v2256_v50 }
  0x3e   : > { %318 = vst.msk [vmem:[#allocation2 + $0x152] sm:$0xff] %vm291_vm2, %v2259_v47  ;;  %319 = vst.msk [vmem:[#allocation2 + $0x15a] sm:$0xff] %vm291_vm2, %v2260_v48 }
  0x3f   : > { %320 = vst.msk [vmem:[#allocation2 + $0x16a] sm:$0xff] %vm291_vm2, %v2263_v54  ;;  %321 = vst.msk [vmem:[#allocation2 + $0x172] sm:$0xff] %vm291_vm2, %v2264_v55 }
  0x40   : > { %322 = vst.msk [vmem:[#allocation2 + $0x182] sm:$0xff] %vm291_vm2, %v2267_v52  ;;  %323 = vst.msk [vmem:[#allocation2 + $0x18a] sm:$0xff] %vm291_vm2, %v2268_v53  ;;  %2636 = vrot.lane.b32.xlu1 %v2635_v2, %s2909_s5  ;;  %2631 = vrot.lane.b32.xlu0 %v2630_v3, %s2909_s5 }
  0x44   : > { %2646 = vrot.lane.b32.xlu1 %v2635_v2, %s2908_s4  ;;  %2641 = vrot.lane.b32.xlu0 %v2630_v3, %s2908_s4 }
  0x48   : > { %2656 = vrot.lane.b32.xlu1 %v2655_v4, %s2909_s5  ;;  %2651 = vrot.lane.b32.xlu0 %v2650_v5, %s2909_s5 }
  0x4c   : > { %2666 = vrot.lane.b32.xlu1 %v2655_v4, %s2908_s4  ;;  %2661 = vrot.lane.b32.xlu0 %v2650_v5, %s2908_s4 }
  0x50   : > { %2676 = vrot.lane.b32.xlu1 %v2675_v6, %s2909_s5  ;;  %2671 = vrot.lane.b32.xlu0 %v2670_v7, %s2909_s5 }
  0x54   : > { %2686 = vrot.lane.b32.xlu1 %v2675_v6, %s2908_s4  ;;  %2681 = vrot.lane.b32.xlu0 %v2670_v7, %s2908_s4 }
  0x58   : > { %2696 = vrot.lane.b32.xlu1 %v2695_v8, %s2909_s5  ;;  %2691 = vrot.lane.b32.xlu0 %v2690_v9, %s2909_s5  ;;  %s4083_s5 = scalar_lea.hbm %s4138_s3, %s2204_s28 }
  0x5c   : > { %2706 = vrot.lane.b32.xlu1 %v2695_v8, %s2908_s4  ;;  %2701 = vrot.lane.b32.xlu0 %v2690_v9, %s2908_s4 }
  0x92   : > { %v2562_v10 = vpop.permute.xlu1 %2561  ;;  %v2552_v11 = vpop.permute.xlu0 %2551 }
  0x93   : > { %v2564_v12 = vunpack.i.h.bf16 %v2562_v10  ;;  %v2563_v13 = vunpack.i.l.bf16 %v2562_v10  ;;  %v2554_v14 = vunpack.i.h.bf16 %v2552_v11  ;;  %v2553_v15 = vunpack.i.l.bf16 %v2552_v11 }
  0x95   : > { %453 = vst.msk [vmem:[#allocation2 + $0x19] sm:$0xff] %vm452_vm4, %v2553_v15  ;;  %454 = vst.msk [vmem:[#allocation2 + $0x21] sm:$0xff] %vm452_vm4, %v2554_v14 }
  0x96   : > { %582 = vst.msk [vmem:[#allocation2 + $0x18] sm:$0xff] %vm581_vm5, %v2563_v13  ;;  %583 = vst.msk [vmem:[#allocation2 + $0x20] sm:$0xff] %vm581_vm5, %v2564_v12  ;;  %v2567_v16 = vpop.permute.xlu1 %2566  ;;  %v2557_v17 = vpop.permute.xlu0 %2556 }
  0x97   : > { %v2569_v18 = vunpack.i.h.bf16 %v2567_v16  ;;  %v2568_v19 = vunpack.i.l.bf16 %v2567_v16  ;;  %v2559_v20 = vunpack.i.h.bf16 %v2557_v17  ;;  %v2558_v21 = vunpack.i.l.bf16 %v2557_v17 }
  0x99   : > { %456 = vst.msk [vmem:[#allocation2 + $0x39] sm:$0xff] %vm452_vm4, %v2559_v20  ;;  %455 = vst.msk [vmem:[#allocation2 + $0x31] sm:$0xff] %vm452_vm4, %v2558_v21 }
  0x9a   : > { %584 = vst.msk [vmem:[#allocation2 + $0x30] sm:$0xff] %vm581_vm5, %v2568_v19  ;;  %585 = vst.msk [vmem:[#allocation2 + $0x38] sm:$0xff] %vm581_vm5, %v2569_v18  ;;  %v2577_v22 = vpop.permute.xlu1 %2576  ;;  %v2572_v23 = vpop.permute.xlu0 %2571 }
  0x9b   : > { %v2579_v24 = vunpack.i.h.bf16 %v2577_v22  ;;  %v2578_v25 = vunpack.i.l.bf16 %v2577_v22  ;;  %v2574_v26 = vunpack.i.h.bf16 %v2572_v23  ;;  %v2573_v27 = vunpack.i.l.bf16 %v2572_v23 }
  0x9d   : > { %460 = vst.msk [vmem:[#allocation2 + $0x69] sm:$0xff] %vm452_vm4, %v2579_v24  ;;  %459 = vst.msk [vmem:[#allocation2 + $0x61] sm:$0xff] %vm452_vm4, %v2578_v25  ;;  %v664_v28 = vld [vmem:[#allocation2 + $0x19] sm:$0xff]  ;;  %v665_v29 = vld [vmem:[#allocation2 + $0x21] sm:$0xff] }
  0x9e   : > { %458 = vst.msk [vmem:[#allocation2 + $0x51] sm:$0xff] %vm452_vm4, %v2574_v26  ;;  %457 = vst.msk [vmem:[#allocation2 + $0x49] sm:$0xff] %vm452_vm4, %v2573_v27  ;;  %v2587_v30 = vpop.permute.xlu1 %2586  ;;  %v2582_v31 = vpop.permute.xlu0 %2581  ;;  %v696_v32 = vpack.c.bf16 %v665_v29, %v664_v28 }
  0x9f   : > { %v2589_v33 = vunpack.i.h.bf16 %v2587_v30  ;;  %v2588_v34 = vunpack.i.l.bf16 %v2587_v30  ;;  %v2584_v35 = vunpack.i.h.bf16 %v2582_v31  ;;  %v2583_v36 = vunpack.i.l.bf16 %v2582_v31 }
  0xa0   : > { %2337 = vmatprep.mubr.msk.bf16.mxu1 %vm170_vm0, %v696_v32  ;;  %2372 = vmatmul.mubr.msk.bf16.vlgmr.msra.gmra.mrb[0].mxu0 %vm170_vm0, %v696_v32 }
  0xa1   : > { %588 = vst.msk [vmem:[#allocation2 + $0x60] sm:$0xff] %vm581_vm5, %v2588_v34  ;;  %589 = vst.msk [vmem:[#allocation2 + $0x68] sm:$0xff] %vm581_vm5, %v2589_v33  ;;  %v666_v37 = vld [vmem:[#allocation2 + $0x31] sm:$0xff]  ;;  %v667_v38 = vld [vmem:[#allocation2 + $0x39] sm:$0xff]  ;;  %2404 = vmatpush3.bf16.msra.mxu0 %v3197_v63 }
  0xa2   : > { %586 = vst.msk [vmem:[#allocation2 + $0x48] sm:$0xff] %vm581_vm5, %v2583_v36  ;;  %587 = vst.msk [vmem:[#allocation2 + $0x50] sm:$0xff] %vm581_vm5, %v2584_v35  ;;  %v2597_v39 = vpop.permute.xlu1 %2596  ;;  %v2592_v40 = vpop.permute.xlu0 %2591  ;;  %v3269_v41 = vpack.c.bf16 %v667_v38, %v666_v37 }
  0xa3   : > { %v2599_v42 = vunpack.i.h.bf16 %v2597_v39  ;;  %v2598_v43 = vunpack.i.l.bf16 %v2597_v39  ;;  %v2594_v44 = vunpack.i.h.bf16 %v2592_v40  ;;  %v2593_v45 = vunpack.i.l.bf16 %v2592_v40 }
  0xa4   : > { %2338 = vmatmul.mubr.msk.bf16.vlgmr.msra.gmra.mrb[0].mxu1 %vm170_vm0, %v3269_v41  ;;  %2375 = vmatprep.mubr.msk.bf16.mxu0 %vm170_vm0, %v3269_v41 }
  0xa5   : > { %464 = vst.msk [vmem:[#allocation2 + $0x99] sm:$0xff] %vm452_vm4, %v2599_v42  ;;  %463 = vst.msk [vmem:[#allocation2 + $0x91] sm:$0xff] %vm452_vm4, %v2598_v43  ;;  %2438 = vmatpush3.bf16.msra.mxu1 %v3192_v60 }
  0xa6   : > { %462 = vst.msk [vmem:[#allocation2 + $0x81] sm:$0xff] %vm452_vm4, %v2594_v44  ;;  %461 = vst.msk [vmem:[#allocation2 + $0x79] sm:$0xff] %vm452_vm4, %v2593_v45  ;;  %v2607_v46 = vpop.permute.xlu1 %2606  ;;  %v2602_v47 = vpop.permute.xlu0 %2601 }
  0xa7   : > { %v2609_v48 = vunpack.i.h.bf16 %v2607_v46  ;;  %v2608_v49 = vunpack.i.l.bf16 %v2607_v46  ;;  %v2604_v50 = vunpack.i.h.bf16 %v2602_v47  ;;  %v2603_v51 = vunpack.i.l.bf16 %v2602_v47 }
  0xa8   : > { %v670_v54 = vld [vmem:[#allocation2 + $0x61] sm:$0xff]  ;;  %v671_v56 = vld [vmem:[#allocation2 + $0x69] sm:$0xff] }
  0xa9   : > { %v668_v52 = vld [vmem:[#allocation2 + $0x49] sm:$0xff]  ;;  %v669_v53 = vld [vmem:[#allocation2 + $0x51] sm:$0xff]  ;;  %592 = vst.msk [vmem:[#allocation2 + $0x90] sm:$0xff] %vm581_vm5, %v2608_v49  ;;  %593 = vst.msk [vmem:[#allocation2 + $0x98] sm:$0xff] %vm581_vm5, %v2609_v48  ;;  %v3286_v59 = vpack.c.bf16 %v671_v56, %v670_v54 }
  0xaa   : > { %590 = vst.msk [vmem:[#allocation2 + $0x78] sm:$0xff] %vm581_vm5, %v2603_v51  ;;  %591 = vst.msk [vmem:[#allocation2 + $0x80] sm:$0xff] %vm581_vm5, %v2604_v50  ;;  %v3284_v55 = vpack.c.bf16 %v669_v53, %v668_v52  ;;  %v2617_v57 = vpop.permute.xlu1 %2616  ;;  %v2612_v58 = vpop.permute.xlu0 %2611 }
  0xab   : > { %v2619_v60 = vunpack.i.h.bf16 %v2617_v57  ;;  %v2618_v61 = vunpack.i.l.bf16 %v2617_v57  ;;  %v2614_v62 = vunpack.i.h.bf16 %v2612_v58  ;;  %v2613_v63 = vunpack.i.l.bf16 %v2612_v58 }
  0xac   : > { %2341 = vmatprep.mubr.msk.bf16.mxu1 %vm170_vm0, %v3284_v55  ;;  %2376 = vmatmul.mubr.msk.bf16.gmra.mrb[4].mxu0 %vm170_vm0, %v3284_v55 }
  0xad   : > { %2342 = vmatmul.mubr.msk.bf16.gmra.mrb[4].mxu1 %vm170_vm0, %v3286_v59  ;;  %2379 = vmatprep.mubr.msk.bf16.mxu0 %vm170_vm0, %v3286_v59  ;;  %468 = vst.msk [vmem:[#allocation2 + $0xc9] sm:$0xff] %vm452_vm4, %v2619_v60  ;;  %467 = vst.msk [vmem:[#allocation2 + $0xc1] sm:$0xff] %vm452_vm4, %v2618_v61 }
  0xae   : > { %466 = vst.msk [vmem:[#allocation2 + $0xb1] sm:$0xff] %vm452_vm4, %v2614_v62  ;;  %465 = vst.msk [vmem:[#allocation2 + $0xa9] sm:$0xff] %vm452_vm4, %v2613_v63  ;;  %v2627_v0 = vpop.permute.xlu1 %2626  ;;  %v2622_v1 = vpop.permute.xlu0 %2621 }
  0xaf   : > { %v2629_v2 = vunpack.i.h.bf16 %v2627_v0  ;;  %v2628_v3 = vunpack.i.l.bf16 %v2627_v0  ;;  %v2624_v4 = vunpack.i.h.bf16 %v2622_v1  ;;  %v2623_v5 = vunpack.i.l.bf16 %v2622_v1 }
  0xb0   : > { %v674_v8 = vld [vmem:[#allocation2 + $0x91] sm:$0xff]  ;;  %v675_v10 = vld [vmem:[#allocation2 + $0x99] sm:$0xff] }
  0xb1   : > { %v672_v6 = vld [vmem:[#allocation2 + $0x79] sm:$0xff]  ;;  %v673_v7 = vld [vmem:[#allocation2 + $0x81] sm:$0xff]  ;;  %596 = vst.msk [vmem:[#allocation2 + $0xc0] sm:$0xff] %vm581_vm5, %v2628_v3  ;;  %597 = vst.msk [vmem:[#allocation2 + $0xc8] sm:$0xff] %vm581_vm5, %v2629_v2  ;;  %v3306_v13 = vpack.c.bf16 %v675_v10, %v674_v8 }
  0xb2   : > { %594 = vst.msk [vmem:[#allocation2 + $0xa8] sm:$0xff] %vm581_vm5, %v2623_v5  ;;  %595 = vst.msk [vmem:[#allocation2 + $0xb0] sm:$0xff] %vm581_vm5, %v2624_v4  ;;  %v3304_v9 = vpack.c.bf16 %v673_v7, %v672_v6  ;;  %v2637_v11 = vpop.permute.xlu1 %2636  ;;  %v2632_v12 = vpop.permute.xlu0 %2631 }
  0xb3   : > { %v2639_v14 = vunpack.i.h.bf16 %v2637_v11  ;;  %v2638_v15 = vunpack.i.l.bf16 %v2637_v11  ;;  %v2634_v16 = vunpack.i.h.bf16 %v2632_v12  ;;  %v2633_v17 = vunpack.i.l.bf16 %v2632_v12 }
  0xb4   : > { %2345 = vmatprep.mubr.msk.bf16.mxu1 %vm170_vm0, %v3304_v9  ;;  %2380 = vmatmul.mubr.msk.bf16.gmra.mrb[8].mxu0 %vm170_vm0, %v3304_v9 }
  0xb5   : > { %2346 = vmatmul.mubr.msk.bf16.gmra.mrb[8].mxu1 %vm170_vm0, %v3306_v13  ;;  %2383 = vmatprep.mubr.msk.bf16.mxu0 %vm170_vm0, %v3306_v13  ;;  %472 = vst.msk [vmem:[#allocation2 + $0xf9] sm:$0xff] %vm452_vm4, %v2639_v14  ;;  %471 = vst.msk [vmem:[#allocation2 + $0xf1] sm:$0xff] %vm452_vm4, %v2638_v15 }
  0xb6   : > { %470 = vst.msk [vmem:[#allocation2 + $0xe1] sm:$0xff] %vm452_vm4, %v2634_v16  ;;  %469 = vst.msk [vmem:[#allocation2 + $0xd9] sm:$0xff] %vm452_vm4, %v2633_v17  ;;  %v2647_v18 = vpop.permute.xlu1 %2646  ;;  %v2642_v19 = vpop.permute.xlu0 %2641 }
  0xb7   : > { %v2649_v20 = vunpack.i.h.bf16 %v2647_v18  ;;  %v2648_v21 = vunpack.i.l.bf16 %v2647_v18  ;;  %v2644_v22 = vunpack.i.h.bf16 %v2642_v19  ;;  %v2643_v23 = vunpack.i.l.bf16 %v2642_v19 }
  0xb8   : > { %v678_v26 = vld [vmem:[#allocation2 + $0xc1] sm:$0xff]  ;;  %v679_v28 = vld [vmem:[#allocation2 + $0xc9] sm:$0xff] }
  0xb9   : > { %v676_v24 = vld [vmem:[#allocation2 + $0xa9] sm:$0xff]  ;;  %v677_v25 = vld [vmem:[#allocation2 + $0xb1] sm:$0xff]  ;;  %600 = vst.msk [vmem:[#allocation2 + $0xf0] sm:$0xff] %vm581_vm5, %v2648_v21  ;;  %601 = vst.msk [vmem:[#allocation2 + $0xf8] sm:$0xff] %vm581_vm5, %v2649_v20  ;;  %v3326_v31 = vpack.c.bf16 %v679_v28, %v678_v26 }
  0xba   : > { %598 = vst.msk [vmem:[#allocation2 + $0xd8] sm:$0xff] %vm581_vm5, %v2643_v23  ;;  %599 = vst.msk [vmem:[#allocation2 + $0xe0] sm:$0xff] %vm581_vm5, %v2644_v22  ;;  %v3324_v27 = vpack.c.bf16 %v677_v25, %v676_v24  ;;  %v2657_v29 = vpop.permute.xlu1 %2656  ;;  %v2652_v30 = vpop.permute.xlu0 %2651  ;;  %v1181_v26 = vld [vmem:[#allocation2 + $0x199] sm:$0xff] }
  0xbb   : > { %v2659_v32 = vunpack.i.h.bf16 %v2657_v29  ;;  %v2658_v33 = vunpack.i.l.bf16 %v2657_v29  ;;  %v2654_v34 = vunpack.i.h.bf16 %v2652_v30  ;;  %v2653_v35 = vunpack.i.l.bf16 %v2652_v30 }
  0xbc   : > { %2349 = vmatprep.mubr.msk.bf16.mxu1 %vm170_vm0, %v3324_v27  ;;  %2384 = vmatmul.mubr.msk.bf16.gmra.mrb[12].mxu0 %vm170_vm0, %v3324_v27 }
  0xbd   : > { %2350 = vmatmul.mubr.msk.bf16.gmra.mrb[12].mxu1 %vm170_vm0, %v3326_v31  ;;  %2405 = vmatprep.mubr.msk.bf16.mxu0 %vm170_vm0, %v3269_v41  ;;  %476 = vst.msk [vmem:[#allocation2 + $0x129] sm:$0xff] %vm452_vm4, %v2659_v32  ;;  %475 = vst.msk [vmem:[#allocation2 + $0x121] sm:$0xff] %vm452_vm4, %v2658_v33 }
  0xbe   : > { %474 = vst.msk [vmem:[#allocation2 + $0x111] sm:$0xff] %vm452_vm4, %v2654_v34  ;;  %473 = vst.msk [vmem:[#allocation2 + $0x109] sm:$0xff] %vm452_vm4, %v2653_v35  ;;  %v2667_v36 = vpop.permute.xlu1 %2666  ;;  %v2662_v37 = vpop.permute.xlu0 %2661 }
  0xbf   : > { %v2669_v38 = vunpack.i.h.bf16 %v2667_v36  ;;  %v2668_v39 = vunpack.i.l.bf16 %v2667_v36  ;;  %v2664_v40 = vunpack.i.h.bf16 %v2662_v37  ;;  %v2663_v42 = vunpack.i.l.bf16 %v2662_v37 }
  0xc0   : > { %v682_v45 = vld [vmem:[#allocation2 + $0xf1] sm:$0xff]  ;;  %v683_v46 = vld [vmem:[#allocation2 + $0xf9] sm:$0xff] }
  0xc1   : > { %v680_v43 = vld [vmem:[#allocation2 + $0xd9] sm:$0xff]  ;;  %v681_v44 = vld [vmem:[#allocation2 + $0xe1] sm:$0xff]  ;;  %604 = vst.msk [vmem:[#allocation2 + $0x120] sm:$0xff] %vm581_vm5, %v2668_v39  ;;  %605 = vst.msk [vmem:[#allocation2 + $0x128] sm:$0xff] %vm581_vm5, %v2669_v38  ;;  %v3346_v49 = vpack.c.bf16 %v683_v46, %v682_v45 }
  0xc2   : > { %602 = vst.msk [vmem:[#allocation2 + $0x108] sm:$0xff] %vm581_vm5, %v2663_v42  ;;  %603 = vst.msk [vmem:[#allocation2 + $0x110] sm:$0xff] %vm581_vm5, %v2664_v40  ;;  %v3344_v41 = vpack.c.bf16 %v681_v44, %v680_v43  ;;  %v2677_v47 = vpop.permute.xlu1 %2676  ;;  %v2672_v48 = vpop.permute.xlu0 %2671 }
  0xc3   : > { %v2679_v50 = vunpack.i.h.bf16 %v2677_v47  ;;  %v2678_v51 = vunpack.i.l.bf16 %v2677_v47  ;;  %v2674_v52 = vunpack.i.h.bf16 %v2672_v48  ;;  %v2673_v53 = vunpack.i.l.bf16 %v2672_v48 }
  0xc4   : > { %2353 = vmatprep.mubr.msk.bf16.mxu1 %vm170_vm0, %v3344_v41  ;;  %2406 = vmatmul.mubr.msk.bf16.vlgmr.msra.gmra.mrb[0].mxu0 %vm170_vm0, %v3284_v55 }
  0xc5   : > { %2354 = vmatmul.mubr.msk.bf16.gmra.mrb[16].mxu1 %vm170_vm0, %v3346_v49  ;;  %2409 = vmatprep.mubr.msk.bf16.mxu0 %vm170_vm0, %v3286_v59  ;;  %480 = vst.msk [vmem:[#allocation2 + $0x159] sm:$0xff] %vm452_vm4, %v2679_v50  ;;  %479 = vst.msk [vmem:[#allocation2 + $0x151] sm:$0xff] %vm452_vm4, %v2678_v51  ;;  %v3411_v50 = vld [vmem:[%s4137_s2] ss:$0 sm:$0xff] }
  0xc6   : > { %478 = vst.msk [vmem:[#allocation2 + $0x141] sm:$0xff] %vm452_vm4, %v2674_v52  ;;  %477 = vst.msk [vmem:[#allocation2 + $0x139] sm:$0xff] %vm452_vm4, %v2673_v53  ;;  %v2687_v54 = vpop.permute.xlu1 %2686  ;;  %v2682_v56 = vpop.permute.xlu0 %2681 }
  0xc7   : > { %v2689_v57 = vunpack.i.h.bf16 %v2687_v54  ;;  %v2688_v58 = vunpack.i.l.bf16 %v2687_v54  ;;  %v2684_v60 = vunpack.i.h.bf16 %v2682_v56  ;;  %v2683_v55 = vunpack.i.l.bf16 %v2682_v56 }
  0xc8   : > { %v686_v63 = vld [vmem:[#allocation2 + $0x121] sm:$0xff]  ;;  %v687_v0 = vld [vmem:[#allocation2 + $0x129] sm:$0xff] }
  0xc9   : > { %v684_v61 = vld [vmem:[#allocation2 + $0x109] sm:$0xff]  ;;  %v685_v62 = vld [vmem:[#allocation2 + $0x111] sm:$0xff]  ;;  %608 = vst.msk [vmem:[#allocation2 + $0x150] sm:$0xff] %vm581_vm5, %v2688_v58  ;;  %609 = vst.msk [vmem:[#allocation2 + $0x158] sm:$0xff] %vm581_vm5, %v2689_v57  ;;  %v707_v3 = vpack.c.bf16 %v687_v0, %v686_v63 }
  0xca   : > { %606 = vst.msk [vmem:[#allocation2 + $0x138] sm:$0xff] %vm581_vm5, %v2683_v55  ;;  %607 = vst.msk [vmem:[#allocation2 + $0x140] sm:$0xff] %vm581_vm5, %v2684_v60  ;;  %v706_v59 = vpack.c.bf16 %v685_v62, %v684_v61  ;;  %v2697_v1 = vpop.permute.xlu1 %2696  ;;  %v2692_v2 = vpop.permute.xlu0 %2691 }
  0xcb   : > { %v2699_v4 = vunpack.i.h.bf16 %v2697_v1  ;;  %v2698_v5 = vunpack.i.l.bf16 %v2697_v1  ;;  %v2694_v6 = vunpack.i.h.bf16 %v2692_v2  ;;  %v2693_v7 = vunpack.i.l.bf16 %v2692_v2 }
  0xcc   : > { %2357 = vmatprep.mubr.msk.bf16.mxu1 %vm170_vm0, %v706_v59  ;;  %2410 = vmatmul.mubr.msk.bf16.gmra.mrb[4].mxu0 %vm170_vm0, %v3304_v9 }
  0xcd   : > { %2358 = vmatmul.mubr.msk.bf16.gmra.mrb[20].mxu1 %vm170_vm0, %v707_v3  ;;  %2413 = vmatprep.mubr.msk.bf16.mxu0 %vm170_vm0, %v3306_v13  ;;  %484 = vst.msk [vmem:[#allocation2 + $0x189] sm:$0xff] %vm452_vm4, %v2699_v4  ;;  %483 = vst.msk [vmem:[#allocation2 + $0x181] sm:$0xff] %vm452_vm4, %v2698_v5 }
  0xce   : > { %482 = vst.msk [vmem:[#allocation2 + $0x171] sm:$0xff] %vm452_vm4, %v2694_v6  ;;  %481 = vst.msk [vmem:[#allocation2 + $0x169] sm:$0xff] %vm452_vm4, %v2693_v7  ;;  %v2707_v8 = vpop.permute.xlu1 %2706  ;;  %v2702_v10 = vpop.permute.xlu0 %2701 }
  0xcf   : > { %v2709_v11 = vunpack.i.h.bf16 %v2707_v8  ;;  %v2708_v12 = vunpack.i.l.bf16 %v2707_v8  ;;  %v2704_v14 = vunpack.i.h.bf16 %v2702_v10  ;;  %v2703_v15 = vunpack.i.l.bf16 %v2702_v10 }
  0xd0   : > { %v690_v17 = vld [vmem:[#allocation2 + $0x151] sm:$0xff]  ;;  %v691_v18 = vld [vmem:[#allocation2 + $0x159] sm:$0xff] }
  0xd1   : > { %v688_v9 = vld [vmem:[#allocation2 + $0x139] sm:$0xff]  ;;  %v689_v16 = vld [vmem:[#allocation2 + $0x141] sm:$0xff]  ;;  %612 = vst.msk [vmem:[#allocation2 + $0x180] sm:$0xff] %vm581_vm5, %v2708_v12  ;;  %613 = vst.msk [vmem:[#allocation2 + $0x188] sm:$0xff] %vm581_vm5, %v2709_v11  ;;  %v709_v19 = vpack.c.bf16 %v691_v18, %v690_v17 }
  0xd2   : > { %610 = vst.msk [vmem:[#allocation2 + $0x168] sm:$0xff] %vm581_vm5, %v2703_v15  ;;  %611 = vst.msk [vmem:[#allocation2 + $0x170] sm:$0xff] %vm581_vm5, %v2704_v14  ;;  %v708_v13 = vpack.c.bf16 %v689_v16, %v688_v9 }
  0xd4   : > { %2361 = vmatprep.mubr.msk.bf16.mxu1 %vm170_vm0, %v708_v13  ;;  %2414 = vmatmul.mubr.msk.bf16.gmra.mrb[8].mxu0 %vm170_vm0, %v3324_v27  ;;  %v1182_v27 = vld [vmem:[#allocation2 + $0x1a1] sm:$0xff] }
  0xd5   : > { %2362 = vmatmul.mubr.msk.bf16.gmra.mrb[24].mxu1 %vm170_vm0, %v709_v19  ;;  %2417 = vmatprep.mubr.msk.bf16.mxu0 %vm170_vm0, %v3326_v31  ;;  %v1198_v28 = vpack.c.bf16 %v1182_v27, %v1181_v26 }
  0xd8   : > { %v694_v22 = vld [vmem:[#allocation2 + $0x181] sm:$0xff]  ;;  %v695_v24 = vld [vmem:[#allocation2 + $0x189] sm:$0xff] }
  0xd9   : > { %v692_v20 = vld [vmem:[#allocation2 + $0x169] sm:$0xff]  ;;  %v693_v21 = vld [vmem:[#allocation2 + $0x171] sm:$0xff]  ;;  %v711_v25 = vpack.c.bf16 %v695_v24, %v694_v22 }
  0xda   : > { %v710_v23 = vpack.c.bf16 %v693_v21, %v692_v20 }
  0xdc   : > { %2365 = vmatprep.mubr.msk.bf16.mxu1 %vm170_vm0, %v710_v23  ;;  %2418 = vmatmul.mubr.msk.bf16.gmra.mrb[12].mxu0 %vm170_vm0, %v3344_v41 }
  0xdd   : > { %2366 = vmatmul.mubr.msk.bf16.gmra.mrb[28].mxu1 %vm170_vm0, %v711_v25  ;;  %2421 = vmatprep.mubr.msk.bf16.mxu0 %vm170_vm0, %v3346_v49 }
  0xde   : > { %2387 = vmatprep.mubr.msk.bf16.mxu1 %vm170_vm0, %v3326_v31 }
  0xe4   : > { %2422 = vmatmul.mubr.msk.bf16.gmra.mrb[16].mxu0 %vm170_vm0, %v706_v59 }
  0xe5   : > { %2388 = vmatmul.mubr.msk.bf16.vlgmr.msra.gmra.mrb[16].mxu1 %vm170_vm0, %v3344_v41  ;;  %2425 = vmatprep.mubr.msk.bf16.mxu0 %vm170_vm0, %v707_v3 }
  0xe6   : > { %2391 = vmatprep.mubr.msk.bf16.mxu1 %vm170_vm0, %v3346_v49 }
  0xec   : > { %2426 = vmatmul.mubr.msk.bf16.gmra.mrb[20].mxu0 %vm170_vm0, %v708_v13 }
  0xed   : > { %2392 = vmatmul.mubr.msk.bf16.gmra.mrb[20].mxu1 %vm170_vm0, %v706_v59  ;;  %2429 = vmatprep.mubr.msk.bf16.mxu0 %vm170_vm0, %v709_v19 }
  0xee   : > { %2395 = vmatprep.mubr.msk.bf16.mxu1 %vm170_vm0, %v707_v3 }
  0xf4   : > { %2430 = vmatmul.mubr.msk.bf16.gmra.mrb[24].mxu0 %vm170_vm0, %v710_v23 }
  0xf5   : > { %2396 = vmatmul.mubr.msk.bf16.gmra.mrb[24].mxu1 %vm170_vm0, %v708_v13  ;;  %2433 = vmatprep.mubr.msk.bf16.mxu0 %vm170_vm0, %v711_v25 }
  0xf6   : > { %2399 = vmatprep.mubr.msk.bf16.mxu1 %vm170_vm0, %v709_v19 }
  0xfc   : > { %2434 = vmatmul.mubr.msk.bf16.gmra.mrb[28].mxu0 %vm170_vm0, %v1198_v28 }
  0xfd   : > { %2400 = vmatmul.mubr.msk.bf16.gmra.mrb[28].mxu1 %vm170_vm0, %v710_v23 }
 0x177   : > { %v2339_v29 = vpop.f32.mrb[0].mxu1 }
 0x178   : > { %v806_v30 = vpop.f32.mrb[1].mxu1 }
 0x179   : > { %v2340_v31 = vpop.f32.mrb[2].mxu1 }
 0x17a   : > { %v809_v32 = vpop.f32.mrb[3].mxu1 }
 0x180   : > { %v2343_v33 = vpop.f32.mrb[4].mxu1 }
 0x181   : > { %v822_v34 = vpop.f32.mrb[5].mxu1 }
 0x182   : > { %v2344_v35 = vpop.f32.mrb[6].mxu1 }
 0x183   : > { %v825_v36 = vpop.f32.mrb[7].mxu1 }
 0x188   : > { %v2347_v37 = vpop.f32.mrb[8].mxu1 }
 0x189   : > { %v838_v38 = vpop.f32.mrb[9].mxu1 }
 0x18a   : > { %v2348_v39 = vpop.f32.mrb[10].mxu1 }
 0x18b   : > { %v841_v40 = vpop.f32.mrb[11].mxu1 }
 0x190   : > { %v2351_v42 = vpop.f32.mrb[12].mxu1 }
 0x191   : > { %v854_v43 = vpop.f32.mrb[13].mxu1 }
 0x192   : > { %v2352_v44 = vpop.f32.mrb[14].mxu1 }
 0x193   : > { %v857_v45 = vpop.f32.mrb[15].mxu1 }
 0x197   : > { %v2407_v41 = vpop.f32.mrb[0].mxu0 }
 0x198   : > { %v2439_v46 = vadd.f32 %v2407_v41, %v2339_v29  ;;  %v1292_v47 = vpop.f32.mrb[1].mxu0 }
 0x199   : > { %v2440_v48 = vadd.f32 %v1292_v47, %v806_v30  ;;  %v2408_v49 = vpop.f32.mrb[2].mxu0 }
 0x19a   : > { %v2441_v51 = vadd.f32 %v2408_v49, %v2340_v31  ;;  %v1295_v52 = vpop.f32.mrb[3].mxu0  ;;  %v3420_v57 = vadd.f32 %v2439_v46, %v3411_v50 }
 0x19b   : > { %v2442_v53 = vadd.f32 %v1295_v52, %v809_v32  ;;  %v3414_v54 = vadd.f32 %v2440_v48, %v3411_v50 }
 0x19c   : > { %v3425_v62 = vadd.f32 %v2441_v51, %v3411_v50 }
 0x19d   : > { %v3417_v56 = vadd.f32 %v2442_v53, %v3411_v50 }
 0x19f   : > { %v1488_v58 = vadd.f32 %v3417_v56, %v3414_v54  ;;  %v2411_v60 = vpop.f32.mrb[4].mxu0 }
 0x1a0   : > { %v2443_v55 = vadd.f32 %v2411_v60, %v2343_v33  ;;  %v1308_v61 = vpop.f32.mrb[5].mxu0 }
 0x1a1   : > { %v1489_v63 = vadd.f32 %v1488_v58, %v3420_v57  ;;  %v2444_v59 = vadd.f32 %v1308_v61, %v822_v34  ;;  %v2412_v0 = vpop.f32.mrb[6].mxu0 }
 0x1a2   : > { %v2445_v1 = vadd.f32 %v2412_v0, %v2344_v35  ;;  %v1311_v2 = vpop.f32.mrb[7].mxu0  ;;  %v3437_v8 = vadd.f32 %v2443_v55, %v3411_v50 }
 0x1a3   : > { %v3429_v3 = vadd.f32 %v2444_v59, %v3411_v50  ;;  %v1490_v4 = vadd.f32 %v1489_v63, %v3425_v62  ;;  %v2446_v5 = vadd.f32 %v1311_v2, %v825_v36 }
 0x1a4   : > { %v3441_v15 = vadd.f32 %v2445_v1, %v3411_v50 }
 0x1a5   : > { %v1491_v6 = vadd.f32 %v1490_v4, %v3429_v3  ;;  %v3434_v7 = vadd.f32 %v2446_v5, %v3411_v50 }
 0x1a7   : > { %v1492_v10 = vadd.f32 %v1491_v6, %v3434_v7  ;;  %v2415_v11 = vpop.f32.mrb[8].mxu0 }
 0x1a8   : > { %v2447_v12 = vadd.f32 %v2415_v11, %v2347_v37  ;;  %v1324_v14 = vpop.f32.mrb[9].mxu0 }
 0x1a9   : > { %v1493_v9 = vadd.f32 %v1492_v10, %v3437_v8  ;;  %v2448_v16 = vadd.f32 %v1324_v14, %v838_v38  ;;  %v2416_v17 = vpop.f32.mrb[10].mxu0 }
 0x1aa   : > { %v2449_v13 = vadd.f32 %v2416_v17, %v2348_v39  ;;  %v1327_v18 = vpop.f32.mrb[11].mxu0  ;;  %v3453_v24 = vadd.f32 %v2447_v12, %v3411_v50 }
 0x1ab   : > { %v3445_v19 = vadd.f32 %v2448_v16, %v3411_v50  ;;  %v1494_v20 = vadd.f32 %v1493_v9, %v3441_v15  ;;  %v2450_v21 = vadd.f32 %v1327_v18, %v841_v40 }
 0x1ac   : > { %v3457_v29 = vadd.f32 %v2449_v13, %v3411_v50 }
 0x1ad   : > { %v1495_v22 = vadd.f32 %v1494_v20, %v3445_v19  ;;  %v3450_v23 = vadd.f32 %v2450_v21, %v3411_v50 }
 0x1af   : > { %v1496_v25 = vadd.f32 %v1495_v22, %v3450_v23  ;;  %v2419_v26 = vpop.f32.mrb[12].mxu0 }
 0x1b0   : > { %v2451_v27 = vadd.f32 %v2419_v26, %v2351_v42  ;;  %v1340_v28 = vpop.f32.mrb[13].mxu0 }
 0x1b1   : > { %v1497_v30 = vadd.f32 %v1496_v25, %v3453_v24  ;;  %v2452_v31 = vadd.f32 %v1340_v28, %v854_v43  ;;  %v2420_v32 = vpop.f32.mrb[14].mxu0 }
 0x1b2   : > { %v2453_v33 = vadd.f32 %v2420_v32, %v2352_v44  ;;  %v1343_v34 = vpop.f32.mrb[15].mxu0  ;;  %v3469_v40 = vadd.f32 %v2451_v27, %v3411_v50 }
 0x1b3   : > { %v3461_v35 = vadd.f32 %v2452_v31, %v3411_v50  ;;  %v1498_v36 = vadd.f32 %v1497_v30, %v3457_v29  ;;  %v2454_v37 = vadd.f32 %v1343_v34, %v857_v45 }
 0x1b4   : > { %v3473_v46 = vadd.f32 %v2453_v33, %v3411_v50 }
 0x1b5   : > { %v1499_v38 = vadd.f32 %v1498_v36, %v3461_v35  ;;  %v3466_v39 = vadd.f32 %v2454_v37, %v3411_v50 }
 0x1b7   : > { %v1500_v42 = vadd.f32 %v1499_v38, %v3466_v39  ;;  %v2423_v43 = vpop.f32.mrb[16].mxu0 }
 0x1b8   : > { %v2389_v41 = vpop.f32.mrb[16].mxu1  ;;  %v1356_v44 = vpop.f32.mrb[17].mxu0 }
 0x1b9   : > { %v1501_v47 = vadd.f32 %v1500_v42, %v3469_v40  ;;  %v2455_v48 = vadd.f32 %v2423_v43, %v2389_v41  ;;  %v1087_v45 = vpop.f32.mrb[17].mxu1  ;;  %v2424_v49 = vpop.f32.mrb[18].mxu0 }
 0x1ba   : > { %v2456_v51 = vadd.f32 %v1356_v44, %v1087_v45  ;;  %v2390_v52 = vpop.f32.mrb[18].mxu1  ;;  %v1359_v53 = vpop.f32.mrb[19].mxu0 }
 0x1bb   : > { %v1502_v58 = vadd.f32 %v1501_v47, %v3473_v46  ;;  %v2457_v60 = vadd.f32 %v2424_v49, %v2390_v52  ;;  %v1090_v55 = vpop.f32.mrb[19].mxu1  ;;  %v3485_v2 = vadd.f32 %v2455_v48, %v3411_v50 }
 0x1bc   : > { %v3478_v61 = vadd.f32 %v2456_v51, %v3411_v50  ;;  %v2458_v63 = vadd.f32 %v1359_v53, %v1090_v55 }
 0x1bd   : > { %v3489_v14 = vadd.f32 %v2457_v60, %v3411_v50 }
 0x1be   : > { %v1503_v59 = vadd.f32 %v1502_v58, %v3478_v61  ;;  %v3482_v0 = vadd.f32 %v2458_v63, %v3411_v50 }
 0x1bf   : > { %v2427_v1 = vpop.f32.mrb[20].mxu0 }
 0x1c0   : > { %v1504_v4 = vadd.f32 %v1503_v59, %v3482_v0  ;;  %v2393_v5 = vpop.f32.mrb[20].mxu1  ;;  %v1372_v6 = vpop.f32.mrb[21].mxu0 }
 0x1c1   : > { %v2459_v10 = vadd.f32 %v2427_v1, %v2393_v5  ;;  %v1103_v11 = vpop.f32.mrb[21].mxu1  ;;  %v2428_v12 = vpop.f32.mrb[22].mxu0 }
 0x1c2   : > { %v1505_v9 = vadd.f32 %v1504_v4, %v3485_v2  ;;  %v2460_v16 = vadd.f32 %v1372_v6, %v1103_v11  ;;  %v2394_v17 = vpop.f32.mrb[22].mxu1  ;;  %v1375_v13 = vpop.f32.mrb[23].mxu0 }
 0x1c3   : > { %v2461_v18 = vadd.f32 %v2428_v12, %v2394_v17  ;;  %v1106_v20 = vpop.f32.mrb[23].mxu1  ;;  %v3501_v30 = vadd.f32 %v2459_v10, %v3411_v50 }
 0x1c4   : > { %v3493_v21 = vadd.f32 %v2460_v16, %v3411_v50  ;;  %v1506_v22 = vadd.f32 %v1505_v9, %v3489_v14  ;;  %v2462_v25 = vadd.f32 %v1375_v13, %v1106_v20 }
 0x1c5   : > { %v1479_v38 = vadd.f32 %v2461_v18, %v3411_v50 }
 0x1c6   : > { %v1507_v26 = vadd.f32 %v1506_v22, %v3493_v21  ;;  %v3498_v27 = vadd.f32 %v2462_v25, %v3411_v50 }
 0x1c7   : > { %v2431_v28 = vpop.f32.mrb[24].mxu0 }
 0x1c8   : > { %v1508_v31 = vadd.f32 %v1507_v26, %v3498_v27  ;;  %v2397_v32 = vpop.f32.mrb[24].mxu1  ;;  %v1388_v33 = vpop.f32.mrb[25].mxu0 }
 0x1c9   : > { %v2463_v34 = vadd.f32 %v2431_v28, %v2397_v32  ;;  %v1119_v36 = vpop.f32.mrb[25].mxu1  ;;  %v2432_v37 = vpop.f32.mrb[26].mxu0 }
 0x1ca   : > { %v1509_v42 = vadd.f32 %v1508_v31, %v3501_v30  ;;  %v2464_v43 = vadd.f32 %v1388_v33, %v1119_v36  ;;  %v2398_v41 = vpop.f32.mrb[26].mxu1  ;;  %v1391_v44 = vpop.f32.mrb[27].mxu0 }
 0x1cb   : > { %v2465_v47 = vadd.f32 %v2432_v37, %v2398_v41  ;;  %v1122_v48 = vpop.f32.mrb[27].mxu1  ;;  %v1482_v60 = vadd.f32 %v2463_v34, %v3411_v50 }
 0x1cc   : > { %v1480_v45 = vadd.f32 %v2464_v43, %v3411_v50  ;;  %v1510_v49 = vadd.f32 %v1509_v42, %v1479_v38  ;;  %v2466_v51 = vadd.f32 %v1391_v44, %v1122_v48 }
 0x1cd   : > { %v1483_v6 = vadd.f32 %v2465_v47, %v3411_v50 }
 0x1ce   : > { %v1511_v52 = vadd.f32 %v1510_v49, %v1480_v45  ;;  %v1481_v53 = vadd.f32 %v2466_v51, %v3411_v50 }
 0x1cf   : > { %v2435_v58 = vpop.f32.mrb[28].mxu0 }
 0x1d0   : > { %v1512_v55 = vadd.f32 %v1511_v52, %v1481_v53  ;;  %v2401_v63 = vpop.f32.mrb[28].mxu1  ;;  %v1404_v59 = vpop.f32.mrb[29].mxu0 }
 0x1d1   : > { %v2467_v1 = vadd.f32 %v2435_v58, %v2401_v63  ;;  %v1135_v4 = vpop.f32.mrb[29].mxu1  ;;  %v2436_v5 = vpop.f32.mrb[30].mxu0 }
 0x1d2   : > { %v1513_v10 = vadd.f32 %v1512_v55, %v1482_v60  ;;  %v2468_v11 = vadd.f32 %v1404_v59, %v1135_v4  ;;  %v2402_v12 = vpop.f32.mrb[30].mxu1  ;;  %v1407_v9 = vpop.f32.mrb[31].mxu0 }
 0x1d3   : > { %v2469_v16 = vadd.f32 %v2436_v5, %v2402_v12  ;;  %v1138_v17 = vpop.f32.mrb[31].mxu1  ;;  %v1486_v26 = vadd.f32 %v2467_v1, %v3411_v50 }
 0x1d4   : > { %v1484_v13 = vadd.f32 %v2468_v11, %v3411_v50  ;;  %v1514_v18 = vadd.f32 %v1513_v10, %v1483_v6  ;;  %v2470_v20 = vadd.f32 %v1407_v9, %v1138_v17 }
 0x1d5   : > { %v1487_v31 = vadd.f32 %v2469_v16, %v3411_v50 }
 0x1d6   : > { %v1515_v22 = vadd.f32 %v1514_v18, %v1484_v13  ;;  %v1485_v25 = vadd.f32 %v2470_v20, %v3411_v50 }
 0x1d8   : > { %v1516_v28 = vadd.f32 %v1515_v22, %v1485_v25 }
 0x1da   : > { %v1517_v32 = vadd.f32 %v1516_v28, %v1486_v26 }
 0x1dc   : > { %v1518_v33 = vadd.f32 %v1517_v32, %v1487_v31 }
 0x1de   : > { %v1519_v34 = vrot.slane %v1518_v33, 4 }
 0x1e0   : > { %v1520_v36 = vadd.f32 %v1519_v34, %v1518_v33 }
 0x1e2   : > { %v1521_v37 = vrot.slane %v1520_v36, 2 }
 0x1e4   : > { %v1522_v42 = vadd.f32 %v1521_v37, %v1520_v36 }
 0x1e6   : > { %v1523_v43 = vrot.slane %v1522_v42, 1 }
 0x1e8   : > { %v1524_v41 = vadd.f32 %v1523_v43, %v1522_v42 }
 0x1ea   : > { %v1526_v44 = vmul.f32 0.00390625, %v1524_v41 }
 0x1ec   : > { %v3515_v47 = vsub.f32 %v3450_v23, %v1526_v44  ;;  %v3518_v48 = vsub.f32 %v3453_v24, %v1526_v44  ;;  %v3521_v49 = vsub.f32 %v3457_v29, %v1526_v44  ;;  %v3524_v50 = vsub.f32 %v3461_v35, %v1526_v44 }
 0x1ed   : > { %v3527_v51 = vsub.f32 %v3466_v39, %v1526_v44  ;;  %v3530_v52 = vsub.f32 %v3469_v40, %v1526_v44  ;;  %v3533_v58 = vsub.f32 %v3473_v46, %v1526_v44  ;;  %v3536_v23 = vsub.f32 %v3478_v61, %v1526_v44 }
 0x1ee   : > { %v3539_v24 = vsub.f32 %v3482_v0, %v1526_v44  ;;  %v3542_v29 = vsub.f32 %v3485_v2, %v1526_v44  ;;  %v3545_v35 = vsub.f32 %v3489_v14, %v1526_v44  ;;  %v3548_v39 = vsub.f32 %v3493_v21, %v1526_v44 }
 0x1ef   : > { %v3551_v40 = vsub.f32 %v3498_v27, %v1526_v44  ;;  %v3554_v46 = vsub.f32 %v3501_v30, %v1526_v44  ;;  %v3556_v61 = vsub.f32 %v1479_v38, %v1526_v44  ;;  %v3558_v55 = vsub.f32 %v1480_v45, %v1526_v44 }
 0x1f0   : > { %v3560_v0 = vsub.f32 %v1481_v53, %v1526_v44  ;;  %v3562_v2 = vsub.f32 %v1482_v60, %v1526_v44  ;;  %v3564_v63 = vsub.f32 %v1483_v6, %v1526_v44  ;;  %v3566_v14 = vsub.f32 %v1484_v13, %v1526_v44 }
 0x1f1   : > { %v3568_v21 = vsub.f32 %v1485_v25, %v1526_v44  ;;  %v3570_v59 = vsub.f32 %v1486_v26, %v1526_v44  ;;  %v3572_v27 = vsub.f32 %v1487_v31, %v1526_v44  ;;  %v3575_v30 = vsub.f32 %v3414_v54, %v1526_v44 }
 0x1f2   : > { %v3578_v38 = vsub.f32 %v3417_v56, %v1526_v44  ;;  %v3581_v45 = vsub.f32 %v3420_v57, %v1526_v44  ;;  %v3588_v1 = vsub.f32 %v3425_v62, %v1526_v44  ;;  %v3591_v4 = vsub.f32 %v3429_v3, %v1526_v44 }
 0x1f3   : > { %v1559_v53 = vmul.f32 %v3575_v30, %v3575_v30  ;;  %v3596_v5 = vsub.f32 %v3434_v7, %v1526_v44  ;;  %v3601_v10 = vsub.f32 %v3437_v8, %v1526_v44  ;;  %v3606_v3 = vsub.f32 %v3441_v15, %v1526_v44 }
 0x1f4   : > { %v1560_v60 = vmul.f32 %v3578_v38, %v3578_v38  ;;  %v1561_v54 = vmul.f32 %v3581_v45, %v3581_v45  ;;  %v1562_v57 = vmul.f32 %v3588_v1, %v3588_v1  ;;  %v1563_v62 = vmul.f32 %v3591_v4, %v3591_v4 }
 0x1f5   : > { %v1564_v12 = vmul.f32 %v3596_v5, %v3596_v5  ;;  %v3611_v7 = vsub.f32 %v3445_v19, %v1526_v44  ;;  %v1565_v16 = vmul.f32 %v3601_v10, %v3601_v10  ;;  %v1566_v8 = vmul.f32 %v3606_v3, %v3606_v3 }
 0x1f6   : > { %v1591_v56 = vadd.f32 %v1560_v60, %v1559_v53  ;;  %v1568_v20 = vmul.f32 %v3515_v47, %v3515_v47  ;;  %v1569_v19 = vmul.f32 %v3518_v48, %v3518_v48  ;;  %v1570_v26 = vmul.f32 %v3521_v49, %v3521_v49 }
 0x1f7   : > { %v1567_v18 = vmul.f32 %v3611_v7, %v3611_v7  ;;  %v1571_v31 = vmul.f32 %v3524_v50, %v3524_v50  ;;  %v1572_v33 = vmul.f32 %v3527_v51, %v3527_v51  ;;  %v1573_v36 = vmul.f32 %v3530_v52, %v3530_v52 }
 0x1f8   : > { %v1592_v6 = vadd.f32 %v1591_v56, %v1561_v54  ;;  %v1574_v42 = vmul.f32 %v3533_v58, %v3533_v58  ;;  %v1575_v41 = vmul.f32 %v3536_v23, %v3536_v23  ;;  %v1576_v53 = vmul.f32 %v3539_v24, %v3539_v24 }
 0x1f9   : > { %v1577_v54 = vmul.f32 %v3542_v29, %v3542_v29 }
 0x1fa   : > { %v1593_v11 = vadd.f32 %v1592_v6, %v1562_v57  ;;  %v1578_v57 = vmul.f32 %v3545_v35, %v3545_v35 }
 0x1fc   : > { %v1594_v9 = vadd.f32 %v1593_v11, %v1563_v62  ;;  %v1579_v62 = vmul.f32 %v3548_v39, %v3548_v39 }
 0x1fe   : > { %v1595_v17 = vadd.f32 %v1594_v9, %v1564_v12  ;;  %v1580_v12 = vmul.f32 %v3551_v40, %v3551_v40 }
 0x200   : > { %v1596_v13 = vadd.f32 %v1595_v17, %v1565_v16  ;;  %v1581_v16 = vmul.f32 %v3554_v46, %v3554_v46 }
 0x202   : > { %v1597_v15 = vadd.f32 %v1596_v13, %v1566_v8  ;;  %v1582_v8 = vmul.f32 %v3556_v61, %v3556_v61 }
 0x204   : > { %v1598_v22 = vadd.f32 %v1597_v15, %v1567_v18  ;;  %v1583_v18 = vmul.f32 %v3558_v55, %v3558_v55 }
 0x206   : > { %v1599_v25 = vadd.f32 %v1598_v22, %v1568_v20  ;;  %v1584_v20 = vmul.f32 %v3560_v0, %v3560_v0 }
 0x208   : > { %v1600_v28 = vadd.f32 %v1599_v25, %v1569_v19  ;;  %v1585_v19 = vmul.f32 %v3562_v2, %v3562_v2 }
 0x20a   : > { %v1601_v32 = vadd.f32 %v1600_v28, %v1570_v26  ;;  %v1586_v26 = vmul.f32 %v3564_v63, %v3564_v63 }
 0x20c   : > { %v1602_v34 = vadd.f32 %v1601_v32, %v1571_v31  ;;  %v1587_v31 = vmul.f32 %v3566_v14, %v3566_v14 }
 0x20e   : > { %v1603_v37 = vadd.f32 %v1602_v34, %v1572_v33  ;;  %v1588_v33 = vmul.f32 %v3568_v21, %v3568_v21 }
 0x210   : > { %v1604_v43 = vadd.f32 %v1603_v37, %v1573_v36  ;;  %v1589_v36 = vmul.f32 %v3570_v59, %v3570_v59 }
 0x212   : > { %v1605_v44 = vadd.f32 %v1604_v43, %v1574_v42  ;;  %v1590_v42 = vmul.f32 %v3572_v27, %v3572_v27 }
 0x214   : > { %v1606_v60 = vadd.f32 %v1605_v44, %v1575_v41 }
 0x216   : > { %v1607_v56 = vadd.f32 %v1606_v60, %v1576_v53 }
 0x218   : > { %v1608_v6 = vadd.f32 %v1607_v56, %v1577_v54 }
 0x21a   : > { %v1609_v11 = vadd.f32 %v1608_v6, %v1578_v57 }
 0x21c   : > { %v1610_v9 = vadd.f32 %v1609_v11, %v1579_v62 }
 0x21e   : > { %v1611_v17 = vadd.f32 %v1610_v9, %v1580_v12  ;;  %v3668_v12 = vld [vmem:[%s4137_s2 + $0x1] ss:$0 sm:$0xff] }
 0x220   : > { %v1612_v13 = vadd.f32 %v1611_v17, %v1581_v16  ;;  %v3674_v16 = vld [vmem:[%s4137_s2 + $0x2] ss:$0 sm:$0xff] }
 0x222   : > { %v1613_v15 = vadd.f32 %v1612_v13, %v1582_v8 }
 0x224   : > { %v1614_v22 = vadd.f32 %v1613_v15, %v1583_v18 }
 0x226   : > { %v1615_v25 = vadd.f32 %v1614_v22, %v1584_v20 }
 0x228   : > { %v1616_v28 = vadd.f32 %v1615_v25, %v1585_v19 }
 0x22a   : > { %v1617_v32 = vadd.f32 %v1616_v28, %v1586_v26 }
 0x22c   : > { %v1618_v34 = vadd.f32 %v1617_v32, %v1587_v31 }
 0x22e   : > { %v1619_v37 = vadd.f32 %v1618_v34, %v1588_v33 }
 0x230   : > { %v1620_v43 = vadd.f32 %v1619_v37, %v1589_v36 }
 0x232   : > { %v1621_v41 = vadd.f32 %v1620_v43, %v1590_v42 }
 0x234   : > { %v1622_v44 = vrot.slane %v1621_v41, 4 }
 0x236   : > { %v1623_v53 = vadd.f32 %v1622_v44, %v1621_v41 }
 0x238   : > { %v1624_v60 = vrot.slane %v1623_v53, 2 }
 0x23a   : > { %v1625_v54 = vadd.f32 %v1624_v60, %v1623_v53 }
 0x23c   : > { %v1626_v56 = vrot.slane %v1625_v54, 1 }
 0x23e   : > { %v1627_v57 = vadd.f32 %v1626_v56, %v1625_v54 }
 0x240   : > { %v1628_v6 = vmul.f32 0.00390625, %v1627_v57 }
 0x242   : > { %v1629_v62 = vadd.f32 1e-05, %v1628_v6 }
 0x244   : > { %2713 = vrsqrt.f32 %v1629_v62 }
 0x24e   : > { %v2714_v11 = vpop.eup %2713 }
 0x24f   : > { %v1660_v9 = vmul.f32 %v2714_v11, %v3568_v21  ;;  %v1631_v18 = vmul.f32 %v2714_v11, %v3575_v30  ;;  %v1632_v15 = vmul.f32 %v2714_v11, %v3578_v38  ;;  %v1633_v20 = vmul.f32 %v2714_v11, %v3581_v45 }
 0x250   : > { %v1634_v21 = vmul.f32 %v2714_v11, %v3588_v1  ;;  %v1635_v19 = vmul.f32 %v2714_v11, %v3591_v4  ;;  %v1636_v25 = vmul.f32 %v2714_v11, %v3596_v5  ;;  %v1637_v26 = vmul.f32 %v2714_v11, %v3601_v10 }
 0x251   : > { %v1697_v17 = vmul.f32 %v3668_v12, %v1660_v9  ;;  %v1638_v28 = vmul.f32 %v2714_v11, %v3606_v3  ;;  %v1639_v31 = vmul.f32 %v2714_v11, %v3611_v7  ;;  %v1640_v32 = vmul.f32 %v2714_v11, %v3515_v47 }
 0x252   : > { %v1641_v30 = vmul.f32 %v2714_v11, %v3518_v48  ;;  %v1642_v38 = vmul.f32 %v2714_v11, %v3521_v49  ;;  %v1643_v45 = vmul.f32 %v2714_v11, %v3524_v50  ;;  %v1644_v1 = vmul.f32 %v2714_v11, %v3527_v51 }
 0x253   : > { %v3678_v8 = vadd.f32 %v3674_v16, %v1697_v17  ;;  %v1645_v4 = vmul.f32 %v2714_v11, %v3530_v52  ;;  %v1646_v5 = vmul.f32 %v2714_v11, %v3533_v58  ;;  %v1656_v10 = vmul.f32 %v2714_v11, %v3560_v0 }
 0x254   : > { %v1657_v3 = vmul.f32 %v2714_v11, %v3562_v2  ;;  %v1658_v7 = vmul.f32 %v2714_v11, %v3564_v63  ;;  %v1659_v47 = vmul.f32 %v2714_v11, %v3566_v14  ;;  %v1661_v48 = vmul.f32 %v2714_v11, %v3570_v59 }
 0x255   : > { %v1766_v13 = vmin.f32 %v3678_v8, 20.0  ;;  %v1662_v49 = vmul.f32 %v2714_v11, %v3572_v27  ;;  %v1647_v50 = vmul.f32 %v2714_v11, %v3536_v23  ;;  %v1648_v51 = vmul.f32 %v2714_v11, %v3539_v24 }
 0x256   : > { %v1649_v52 = vmul.f32 %v2714_v11, %v3542_v29  ;;  %v1650_v58 = vmul.f32 %v2714_v11, %v3545_v35  ;;  %v1651_v0 = vmul.f32 %v2714_v11, %v3548_v39  ;;  %v1652_v2 = vmul.f32 %v2714_v11, %v3551_v40 }
 0x257   : > { %v1827_v22 = vmul.f32 1.442695, %v1766_v13  ;;  %v1653_v63 = vmul.f32 %v2714_v11, %v3554_v46  ;;  %v1654_v14 = vmul.f32 %v2714_v11, %v3556_v61  ;;  %v1655_v59 = vmul.f32 %v2714_v11, %v3558_v55 }
 0x258   : > { %v1668_v27 = vmul.f32 %v3668_v12, %v1631_v18  ;;  %v1693_v23 = vmul.f32 %v3668_v12, %v1656_v10  ;;  %v1694_v24 = vmul.f32 %v3668_v12, %v1657_v3  ;;  %v1695_v29 = vmul.f32 %v3668_v12, %v1658_v7 }
 0x259   : > { %2715 = vpow2.f32 %v1827_v22  ;;  %v1696_v35 = vmul.f32 %v3668_v12, %v1659_v47  ;;  %v1698_v39 = vmul.f32 %v3668_v12, %v1661_v48  ;;  %v1699_v40 = vmul.f32 %v3668_v12, %v1662_v49 }
 0x25a   : > { %v1669_v46 = vmul.f32 %v3668_v12, %v1632_v15  ;;  %v1670_v61 = vmul.f32 %v3668_v12, %v1633_v20  ;;  %v1671_v55 = vmul.f32 %v3668_v12, %v1634_v21  ;;  %v1672_v33 = vmul.f32 %v3668_v12, %v1635_v19 }
 0x25b   : > { %v1673_v34 = vmul.f32 %v3668_v12, %v1636_v25  ;;  %v1674_v36 = vmul.f32 %v3668_v12, %v1637_v26  ;;  %v1675_v37 = vmul.f32 %v3668_v12, %v1638_v28  ;;  %v1676_v42 = vmul.f32 %v3668_v12, %v1639_v31 }
 0x25c   : > { %v1677_v43 = vmul.f32 %v3668_v12, %v1640_v32  ;;  %v1678_v41 = vmul.f32 %v3668_v12, %v1641_v30  ;;  %v1679_v44 = vmul.f32 %v3668_v12, %v1642_v38  ;;  %v1680_v53 = vmul.f32 %v3668_v12, %v1643_v45 }
 0x25d   : > { %v1681_v54 = vmul.f32 %v3668_v12, %v1644_v1  ;;  %v1682_v56 = vmul.f32 %v3668_v12, %v1645_v4  ;;  %v1683_v57 = vmul.f32 %v3668_v12, %v1646_v5  ;;  %v1684_v6 = vmul.f32 %v3668_v12, %v1647_v50 }
 0x25e   : > { %v1685_v11 = vmul.f32 %v3668_v12, %v1648_v51  ;;  %v1686_v9 = vmul.f32 %v3668_v12, %v1649_v52  ;;  %v1687_v17 = vmul.f32 %v3668_v12, %v1650_v58  ;;  %v1688_v13 = vmul.f32 %v3668_v12, %v1651_v0 }
 0x25f   : > { %v1689_v18 = vmul.f32 %v3668_v12, %v1652_v2  ;;  %v1690_v15 = vmul.f32 %v3668_v12, %v1653_v63  ;;  %v1691_v20 = vmul.f32 %v3668_v12, %v1654_v14  ;;  %v1692_v22 = vmul.f32 %v3668_v12, %v1655_v59 }
 0x260   : > { %v3746_v19 = vadd.f32 %v3674_v16, %v1668_v27  ;;  %v3749_v25 = vadd.f32 %v3674_v16, %v1693_v23  ;;  %v3752_v26 = vadd.f32 %v3674_v16, %v1694_v24  ;;  %v3755_v28 = vadd.f32 %v3674_v16, %v1695_v29 }
 0x261   : > { %v3758_v31 = vadd.f32 %v3674_v16, %v1696_v35  ;;  %v3761_v32 = vadd.f32 %v3674_v16, %v1698_v39  ;;  %v3765_v30 = vadd.f32 %v3674_v16, %v1669_v46  ;;  %v3768_v38 = vadd.f32 %v3674_v16, %v1670_v61 }
 0x262   : > { %4165 = vst [vmem:[#allocation6_spill] sm:$0xff] %v3749_v25  ;;  %4166 = vst [vmem:[#allocation7_spill] sm:$0xff] %v3752_v26  ;;  %v3771_v45 = vadd.f32 %v3674_v16, %v1699_v40  ;;  %v3774_v1 = vadd.f32 %v3674_v16, %v1671_v55  ;;  %v3777_v4 = vadd.f32 %v3674_v16, %v1672_v33  ;;  %v1737_v0 = vmin.f32 %v3746_v19, 20.0 }
 0x263   : > { %v2716_v60 = vpop.eup %2715  ;;  %4167 = vst [vmem:[#allocation8_spill] sm:$0xff] %v3755_v28  ;;  %4168 = vst [vmem:[#allocation9_spill] sm:$0xff] %v3758_v31  ;;  %v3780_v5 = vadd.f32 %v3674_v16, %v1673_v34  ;;  %v3783_v10 = vadd.f32 %v3674_v16, %v1674_v36  ;;  %v3786_v3 = vadd.f32 %v3674_v16, %v1675_v37  ;;  %v1738_v2 = vmin.f32 %v3765_v30, 20.0 }
 0x264   : > { %v1862_v62 = vadd.f32 2.0, %v2716_v60  ;;  %4169 = vst [vmem:[#allocation10_spill] sm:$0xff] %v3761_v32  ;;  %4170 = vst [vmem:[#allocation11_spill] sm:$0xff] %v3771_v45  ;;  %v3789_v7 = vadd.f32 %v3674_v16, %v1676_v42  ;;  %v3792_v47 = vadd.f32 %v3674_v16, %v1677_v43  ;;  %v3795_v48 = vadd.f32 %v3674_v16, %v1678_v41 }
 0x265   : > { %v3798_v49 = vadd.f32 %v3674_v16, %v1679_v44  ;;  %v3801_v50 = vadd.f32 %v3674_v16, %v1680_v53  ;;  %v3804_v51 = vadd.f32 %v3674_v16, %v1681_v54  ;;  %v3807_v52 = vadd.f32 %v3674_v16, %v1682_v56 }
 0x266   : > { %v3742_v21 = vmul.f32 %v2716_v60, %v1862_v62  ;;  %4171 = vst [vmem:[#allocation12_spill] sm:$0xff] %v3795_v48  ;;  %v3810_v58 = vadd.f32 %v3674_v16, %v1683_v57  ;;  %v3815_v63 = vadd.f32 %v3674_v16, %v1684_v6  ;;  %v3818_v14 = vadd.f32 %v3674_v16, %v1685_v11 }
 0x267   : > { %4172 = vst [vmem:[#allocation13_spill] sm:$0xff] %v3798_v49  ;;  %4173 = vst [vmem:[#allocation14_spill] sm:$0xff] %v3801_v50  ;;  %v1739_v59 = vmin.f32 %v3768_v38, 20.0  ;;  %v1740_v27 = vmin.f32 %v3774_v1, 20.0  ;;  %v3823_v23 = vadd.f32 %v3674_v16, %v1686_v9  ;;  %v3826_v24 = vadd.f32 %v3674_v16, %v1687_v17 }
 0x268   : > { %v1926_v12 = vadd.f32 2.0, %v3742_v21  ;;  %4174 = vst [vmem:[#allocation15_spill] sm:$0xff] %v3804_v51  ;;  %4175 = vst [vmem:[#allocation16_spill] sm:$0xff] %v3807_v52  ;;  %v3829_v29 = vadd.f32 %v3674_v16, %v1688_v13  ;;  %v1741_v35 = vmin.f32 %v3777_v4, 20.0  ;;  %v3833_v39 = vadd.f32 %v3674_v16, %v1689_v18 }
 0x269   : > { %4176 = vst [vmem:[#allocation17_spill] sm:$0xff] %v3810_v58  ;;  %4177 = vst [vmem:[#allocation18_spill] sm:$0xff] %v3815_v63  ;;  %v3836_v40 = vadd.f32 %v3674_v16, %v1690_v15  ;;  %v3839_v46 = vadd.f32 %v3674_v16, %v1691_v20  ;;  %v1742_v61 = vmin.f32 %v3780_v5, 20.0  ;;  %v3844_v55 = vadd.f32 %v3674_v16, %v1692_v22 }
 0x26a   : > { %2717 = vrcp.f32 %v1926_v12  ;;  %4178 = vst [vmem:[#allocation19_spill] sm:$0xff] %v3818_v14  ;;  %4179 = vst [vmem:[#allocation20_spill] sm:$0xff] %v3823_v23  ;;  %v1743_v33 = vmin.f32 %v3783_v10, 20.0  ;;  %v1769_v34 = vmul.f32 1.442695, %v1737_v0  ;;  %v1744_v37 = vmin.f32 %v3786_v3, 20.0 }
 0x26b   : > { %4180 = vst [vmem:[#allocation21_spill] sm:$0xff] %v3826_v24  ;;  %4181 = vst [vmem:[#allocation22_spill] sm:$0xff] %v3829_v29  ;;  %v1771_v36 = vmul.f32 1.442695, %v1738_v2  ;;  %v1745_v42 = vmin.f32 %v3789_v7, 20.0  ;;  %v1746_v44 = vmin.f32 %v3792_v47, 20.0 }
 0x26c   : > { %4182 = vst [vmem:[#allocation23_spill] sm:$0xff] %v3833_v39  ;;  %4183 = vst [vmem:[#allocation24_spill] sm:$0xff] %v3836_v40  ;;  %v1773_v43 = vmul.f32 1.442695, %v1739_v59  ;;  %v1775_v41 = vmul.f32 1.442695, %v1740_v27  ;;  %2719 = vpow2.f32 %v1769_v34 }
 0x26d   : > { %4184 = vst [vmem:[#allocation25_spill] sm:$0xff] %v3839_v46  ;;  %4185 = vst [vmem:[#allocation26_spill] sm:$0xff] %v3844_v55  ;;  %v1747_v53 = vmin.f32 %v3795_v48, 20.0  ;;  %v1777_v60 = vmul.f32 1.442695, %v1741_v35  ;;  %v1748_v16 = vmin.f32 %v3798_v49, 20.0  ;;  %2721 = vpow2.f32 %v1771_v36 }
 0x26e   : > { %v1749_v54 = vmin.f32 %v3801_v50, 20.0  ;;  %v1779_v56 = vmul.f32 1.442695, %v1742_v61  ;;  %v1750_v6 = vmin.f32 %v3804_v51, 20.0  ;;  %v1751_v62 = vmin.f32 %v3807_v52, 20.0 }
 0x26f   : > { %2723 = vpow2.f32 %v1773_v43  ;;  %v1781_v11 = vmul.f32 1.442695, %v1743_v33  ;;  %v1752_v17 = vmin.f32 %v3810_v58, 20.0  ;;  %v1783_v13 = vmul.f32 1.442695, %v1744_v37 }
 0x270   : > { %2725 = vpow2.f32 %v1775_v41  ;;  %v1753_v18 = vmin.f32 %v3815_v63, 20.0  ;;  %v1754_v15 = vmin.f32 %v3818_v14, 20.0  ;;  %v1785_v20 = vmul.f32 1.442695, %v1745_v42 }
 0x271   : > { %2727 = vpow2.f32 %v1777_v60  ;;  %v1755_v12 = vmin.f32 %v3823_v23, 20.0  ;;  %v1787_v0 = vmul.f32 1.442695, %v1746_v44  ;;  %v1756_v2 = vmin.f32 %v3826_v24, 20.0 }
 0x272   : > { %2729 = vpow2.f32 %v1779_v56  ;;  %v1789_v59 = vmul.f32 1.442695, %v1747_v53  ;;  %v1758_v27 = vmin.f32 %v3833_v39, 20.0  ;;  %v1759_v35 = vmin.f32 %v3836_v40, 20.0 }
 0x273   : > { %2731 = vpow2.f32 %v1781_v11  ;;  %v1760_v61 = vmin.f32 %v3839_v46, 20.0  ;;  %v1761_v33 = vmin.f32 %v3844_v55, 20.0  ;;  %v1793_v34 = vmul.f32 1.442695, %v1749_v54 }
 0x274   : > { %v2718_v57 = vpop.eup %2717  ;;  %2733 = vpow2.f32 %v1783_v13  ;;  %v1762_v36 = vmin.f32 %v3749_v25, 20.0  ;;  %v1763_v37 = vmin.f32 %v3752_v26, 20.0  ;;  %v1795_v42 = vmul.f32 1.442695, %v1750_v6 }
 0x275   : > { %v1988_v9 = vmul.f32 %v2718_v57, %v3742_v21  ;;  %v1757_v21 = vmin.f32 %v3829_v29, 20.0  ;;  %2735 = vpow2.f32 %v1785_v20  ;;  %v1764_v41 = vmin.f32 %v3755_v28, 20.0 }
 0x276   : > { %2737 = vpow2.f32 %v1787_v0  ;;  %v2720_v43 = vpop.eup %2719  ;;  %v1765_v44 = vmin.f32 %v3758_v31, 20.0  ;;  %v1797_v53 = vmul.f32 1.442695, %v1751_v62  ;;  %v1768_v56 = vmin.f32 %v3771_v45, 20.0 }
 0x277   : > { %v2022_v22 = vmul.f32 %v1988_v9, %v3678_v8  ;;  %v1791_v8 = vmul.f32 1.442695, %v1748_v16  ;;  %2739 = vpow2.f32 %v1789_v59  ;;  %v2722_v60 = vpop.eup %2721  ;;  %v1767_v16 = vmin.f32 %v3761_v32, 20.0 }
 0x278   : > { %v1799_v54 = vmul.f32 1.442695, %v1752_v17  ;;  %v1801_v11 = vmul.f32 1.442695, %v1753_v18  ;;  %v1803_v9 = vmul.f32 1.442695, %v1754_v15 }
 0x279   : > { %2054 = vst [vmem:[%s3865_s27 + $0xe8] sm:$0xff] %v2022_v22  ;;  %2741 = vpow2.f32 %v1791_v8  ;;  %v2724_v57 = vpop.eup %2723  ;;  %v1805_v13 = vmul.f32 1.442695, %v1755_v12  ;;  %v1807_v20 = vmul.f32 1.442695, %v1756_v2  ;;  %v1833_v0 = vadd.f32 2.0, %v2720_v43 }
 0x27a   : > { %2743 = vpow2.f32 %v1793_v34  ;;  %v2726_v6 = vpop.eup %2725  ;;  %v1809_v22 = vmul.f32 1.442695, %v1757_v21  ;;  %v1811_v62 = vmul.f32 1.442695, %v1758_v27  ;;  %v1813_v59 = vmul.f32 1.442695, %v1759_v35 }
 0x27b   : > { %2745 = vpow2.f32 %v1795_v42  ;;  %v2728_v31 = vpop.eup %2727  ;;  %v1834_v28 = vadd.f32 2.0, %v2722_v60  ;;  %v1815_v45 = vmul.f32 1.442695, %v1760_v61  ;;  %v1817_v8 = vmul.f32 1.442695, %v1761_v33 }
 0x27c   : > { %2747 = vpow2.f32 %v1797_v53  ;;  %v2730_v32 = vpop.eup %2729  ;;  %v1819_v17 = vmul.f32 1.442695, %v1762_v36  ;;  %v1821_v18 = vmul.f32 1.442695, %v1763_v37  ;;  %v1823_v15 = vmul.f32 1.442695, %v1764_v41 }
 0x27d   : > { %2749 = vpow2.f32 %v1799_v54  ;;  %v2732_v26 = vpop.eup %2731  ;;  %v1835_v12 = vadd.f32 2.0, %v2724_v57  ;;  %v1825_v2 = vmul.f32 1.442695, %v1765_v44  ;;  %v1829_v21 = vmul.f32 1.442695, %v1767_v16 }
 0x27e   : > { %2751 = vpow2.f32 %v1801_v11  ;;  %v2734_v34 = vpop.eup %2733  ;;  %v3878_v42 = vmul.f32 %v2720_v43, %v1833_v0  ;;  %v1836_v27 = vadd.f32 2.0, %v2726_v6  ;;  %v1837_v35 = vadd.f32 2.0, %v2728_v31 }
 0x27f   : > { %2753 = vpow2.f32 %v1803_v9  ;;  %v2736_v53 = vpop.eup %2735  ;;  %v3880_v25 = vmul.f32 %v2722_v60, %v1834_v28  ;;  %v1831_v33 = vmul.f32 1.442695, %v1768_v56  ;;  %v1838_v36 = vadd.f32 2.0, %v2730_v32 }
 0x280   : > { %2755 = vpow2.f32 %v1805_v13  ;;  %v2738_v61 = vpop.eup %2737  ;;  %v1839_v54 = vadd.f32 2.0, %v2732_v26  ;;  %v1840_v41 = vadd.f32 2.0, %v2734_v34  ;;  %v1841_v11 = vadd.f32 2.0, %v2736_v53 }
 0x281   : > { %2757 = vpow2.f32 %v1807_v20  ;;  %v2740_v37 = vpop.eup %2739  ;;  %v3882_v9 = vmul.f32 %v2724_v57, %v1835_v12  ;;  %v1842_v43 = vadd.f32 2.0, %v2738_v61  ;;  %v1897_v13 = vadd.f32 2.0, %v3878_v42 }
 0x282   : > { %2759 = vpow2.f32 %v1809_v22  ;;  %v1843_v16 = vadd.f32 2.0, %v2740_v37  ;;  %v3885_v28 = vmul.f32 %v2726_v6, %v1836_v27  ;;  %v3887_v60 = vmul.f32 %v2728_v31, %v1837_v35 }
 0x283   : > { %v2742_v44 = vpop.eup %2741  ;;  %2761 = vpow2.f32 %v1811_v62  ;;  %v1898_v56 = vadd.f32 2.0, %v3880_v25  ;;  %v3890_v55 = vmul.f32 %v2730_v32, %v1838_v36  ;;  %v3892_v57 = vmul.f32 %v2732_v26, %v1839_v54 }
 0x284   : > { %v2744_v0 = vpop.eup %2743  ;;  %2763 = vpow2.f32 %v1813_v59  ;;  %v1844_v22 = vadd.f32 2.0, %v2742_v44  ;;  %v3894_v12 = vmul.f32 %v2734_v34, %v1840_v41  ;;  %v3896_v46 = vmul.f32 %v2736_v53, %v1841_v11 }
 0x285   : > { %v2746_v20 = vpop.eup %2745  ;;  %2765 = vpow2.f32 %v1815_v45  ;;  %v1899_v6 = vadd.f32 2.0, %v3882_v9  ;;  %v1845_v31 = vadd.f32 2.0, %v2744_v0  ;;  %v3899_v27 = vmul.f32 %v2738_v61, %v1842_v43 }
 0x286   : > { %v2748_v62 = vpop.eup %2747  ;;  %2767 = vpow2.f32 %v1817_v8  ;;  %v3901_v35 = vmul.f32 %v2740_v37, %v1843_v16  ;;  %v1846_v32 = vadd.f32 2.0, %v2746_v20  ;;  %v1900_v26 = vadd.f32 2.0, %v3885_v28 }
 0x287   : > { %v2750_v59 = vpop.eup %2749  ;;  %2769 = vpow2.f32 %v1819_v17  ;;  %v1901_v8 = vadd.f32 2.0, %v3887_v60  ;;  %v3905_v53 = vmul.f32 %v2742_v44, %v1844_v22  ;;  %v1902_v36 = vadd.f32 2.0, %v3890_v55 }
 0x288   : > { %v2752_v45 = vpop.eup %2751  ;;  %2771 = vpow2.f32 %v1821_v18  ;;  %v1903_v17 = vadd.f32 2.0, %v3892_v57  ;;  %v1847_v61 = vadd.f32 2.0, %v2748_v62  ;;  %v1904_v37 = vadd.f32 2.0, %v3894_v12 }
 0x289   : > { %v2754_v34 = vpop.eup %2753  ;;  %2773 = vpow2.f32 %v1823_v15  ;;  %v1905_v18 = vadd.f32 2.0, %v3896_v46  ;;  %v3911_v11 = vmul.f32 %v2744_v0, %v1845_v31  ;;  %v1906_v43 = vadd.f32 2.0, %v3899_v27 }
 0x28a   : > { %v2756_v54 = vpop.eup %2755  ;;  %2775 = vpow2.f32 %v1825_v2  ;;  %v1907_v15 = vadd.f32 2.0, %v3901_v35  ;;  %v1848_v16 = vadd.f32 2.0, %v2750_v59  ;;  %v1849_v22 = vadd.f32 2.0, %v2752_v45 }
 0x28b   : > { %v2758_v41 = vpop.eup %2757  ;;  %2777 = vpow2.f32 %v1829_v21  ;;  %v3915_v40 = vmul.f32 %v2746_v20, %v1846_v32  ;;  %v1850_v39 = vadd.f32 2.0, %v2754_v34  ;;  %v1851_v29 = vadd.f32 2.0, %v2756_v54 }
 0x28c   : > { %v2760_v44 = vpop.eup %2759  ;;  %2779 = vpow2.f32 %v1831_v33  ;;  %v1908_v24 = vadd.f32 2.0, %v3905_v53  ;;  %v1852_v21 = vadd.f32 2.0, %v2758_v41  ;;  %v3918_v31 = vmul.f32 %v2748_v62, %v1847_v61 }
 0x28d   : > { %v2762_v2 = vpop.eup %2761  ;;  %2781 = vrcp.f32 %v1897_v13  ;;  %v1853_v0 = vadd.f32 2.0, %v2760_v44  ;;  %v1909_v33 = vadd.f32 2.0, %v3911_v11  ;;  %v3921_v32 = vmul.f32 %v2750_v59, %v1848_v16 }
 0x28e   : > { %v2764_v23 = vpop.eup %2763  ;;  %2783 = vrcp.f32 %v1898_v56  ;;  %v1854_v63 = vadd.f32 2.0, %v2762_v2  ;;  %v3923_v52 = vmul.f32 %v2752_v45, %v1849_v22  ;;  %v1910_v51 = vadd.f32 2.0, %v3915_v40 }
 0x28f   : > { %v2766_v14 = vpop.eup %2765  ;;  %v1855_v58 = vadd.f32 2.0, %v2764_v23  ;;  %2785 = vrcp.f32 %v1899_v6  ;;  %v3926_v49 = vmul.f32 %v2754_v34, %v1850_v39  ;;  %v3928_v62 = vmul.f32 %v2756_v54, %v1851_v29 }
 0x290   : > { %v2768_v20 = vpop.eup %2767  ;;  %2787 = vrcp.f32 %v1900_v26  ;;  %v1856_v50 = vadd.f32 2.0, %v2766_v14  ;;  %v3930_v61 = vmul.f32 %v2758_v41, %v1852_v21  ;;  %v3932_v48 = vmul.f32 %v2760_v44, %v1853_v0 }
 0x291   : > { %v2770_v13 = vpop.eup %2769  ;;  %2789 = vrcp.f32 %v1901_v8  ;;  %v1911_v6 = vadd.f32 2.0, %v3918_v31  ;;  %v1857_v45 = vadd.f32 2.0, %v2768_v20  ;;  %v3935_v16 = vmul.f32 %v2762_v2, %v1854_v63 }
 0x292   : > { %v2772_v56 = vpop.eup %2771  ;;  %4186 = vst [vmem:[#allocation27_spill] sm:$0xff] %v3930_v61  ;;  %4187 = vst [vmem:[#allocation28_spill] sm:$0xff] %v3932_v48  ;;  %2791 = vrcp.f32 %v1902_v36  ;;  %v3937_v26 = vmul.f32 %v2764_v23, %v1855_v58  ;;  %v1858_v29 = vadd.f32 2.0, %v2770_v13  ;;  %v1912_v8 = vadd.f32 2.0, %v3921_v32 }
 0x293   : > { %v2774_v59 = vpop.eup %2773  ;;  %2793 = vrcp.f32 %v1903_v17  ;;  %v1913_v34 = vadd.f32 2.0, %v3923_v52  ;;  %v3945_v41 = vmul.f32 %v2766_v14, %v1856_v50  ;;  %v1914_v36 = vadd.f32 2.0, %v3926_v49 }
 0x294   : > { %4188 = vst [vmem:[#allocation29_spill] sm:$0xff] %v3937_v26  ;;  %v3939_v39 = vpop.eup %2775  ;;  %2795 = vrcp.f32 %v1904_v37  ;;  %v1915_v63 = vadd.f32 2.0, %v3928_v62  ;;  %v1859_v23 = vadd.f32 2.0, %v2772_v56  ;;  %v1916_v17 = vadd.f32 2.0, %v3930_v61 }
 0x295   : > { %v3943_v54 = vpop.eup %2777  ;;  %2797 = vrcp.f32 %v1905_v18  ;;  %v1917_v44 = vadd.f32 2.0, %v3932_v48  ;;  %v3953_v2 = vmul.f32 %v2768_v20, %v1857_v45  ;;  %v1918_v37 = vadd.f32 2.0, %v3935_v16 }
 0x296   : > { %v3949_v58 = vpop.eup %2779  ;;  %2799 = vrcp.f32 %v1906_v43  ;;  %v3957_v50 = vadd.f32 2.0, %v3937_v26  ;;  %v1860_v21 = vadd.f32 2.0, %v2774_v59  ;;  %v3959_v18 = vmul.f32 %v2770_v13, %v1858_v29 }
 0x297   : > { %v2782_v22 = vpop.eup %2781  ;;  %2801 = vrcp.f32 %v1907_v15  ;;  %v1861_v48 = vadd.f32 2.0, %v3939_v39  ;;  %v3964_v43 = vadd.f32 2.0, %v3945_v41  ;;  %v3967_v26 = vmul.f32 %v2772_v56, %v1859_v23 }
 0x298   : > { %v2784_v14 = vpop.eup %2783  ;;  %v1930_v0 = vmul.f32 %v2782_v22, %v3878_v42  ;;  %2803 = vrcp.f32 %v1908_v24  ;;  %v1921_v24 = vadd.f32 2.0, %v3953_v2 }
 0x299   : > { %v2786_v61 = vpop.eup %2785  ;;  %v1932_v20 = vmul.f32 %v2784_v14, %v3880_v25  ;;  %2805 = vrcp.f32 %v1909_v33  ;;  %v1863_v33 = vadd.f32 2.0, %v3943_v54  ;;  %v3992_v23 = vmul.f32 %v3939_v39, %v1861_v48 }
 0x29a   : > { %v2788_v45 = vpop.eup %2787  ;;  %v1934_v15 = vmul.f32 %v2786_v61, %v3882_v9  ;;  %2807 = vrcp.f32 %v1910_v51  ;;  %v1993_v13 = vmul.f32 %v1930_v0, %v3746_v19  ;;  %v3978_v9 = vmul.f32 %v2774_v59, %v1860_v21 }
 0x29b   : > { %v2790_v42 = vpop.eup %2789  ;;  %v1936_v29 = vmul.f32 %v2788_v45, %v3885_v28  ;;  %2809 = vrcp.f32 %v1911_v6  ;;  %v1994_v22 = vmul.f32 %v1932_v20, %v3765_v30  ;;  %v1922_v6 = vadd.f32 2.0, %v3959_v18 }
 0x29c   : > { %v2792_v25 = vpop.eup %2791  ;;  %v1938_v56 = vmul.f32 %v2790_v42, %v3887_v60  ;;  %2811 = vrcp.f32 %v1912_v8  ;;  %v1995_v51 = vmul.f32 %v1934_v15, %v3768_v38  ;;  %2025 = vst [vmem:[%s3865_s27] sm:$0xff] %v1993_v13  ;;  %v1864_v59 = vadd.f32 2.0, %v3949_v58  ;;  %v4192_v42 = vld [vmem:[#allocation15_spill] sm:$0xff] }
 0x29d   : > { %v2794_v19 = vpop.eup %2793  ;;  %v1940_v61 = vmul.f32 %v2792_v25, %v3890_v55  ;;  %2813 = vrcp.f32 %v1913_v34  ;;  %v1996_v28 = vmul.f32 %v1936_v29, %v3774_v1  ;;  %2026 = vst [vmem:[%s3865_s27 + $0x8] sm:$0xff] %v1994_v22  ;;  %v1923_v14 = vadd.f32 2.0, %v3967_v26 }
 0x29e   : > { %v2796_v30 = vpop.eup %2795  ;;  %v1942_v60 = vmul.f32 %v2794_v19, %v3892_v57  ;;  %2815 = vrcp.f32 %v1914_v36  ;;  %v1997_v38 = vmul.f32 %v1938_v56, %v3777_v4  ;;  %2027 = vst [vmem:[%s3865_s27 + $0x10] sm:$0xff] %v1995_v51  ;;  %v4002_v48 = vmul.f32 %v3943_v54, %v1863_v33  ;;  %v4194_v51 = vld [vmem:[#allocation17_spill] sm:$0xff] }
 0x29f   : > { %v2798_v8 = vpop.eup %2797  ;;  %v1944_v55 = vmul.f32 %v2796_v30, %v3894_v12  ;;  %2817 = vrcp.f32 %v1915_v63  ;;  %v1998_v1 = vmul.f32 %v1940_v61, %v3780_v5  ;;  %2028 = vst [vmem:[%s3865_s27 + $0x18] sm:$0xff] %v1996_v28  ;;  %v1925_v21 = vadd.f32 2.0, %v3992_v23  ;;  %v4195_v28 = vld [vmem:[#allocation18_spill] sm:$0xff] }
 0x2a0   : > { %v2800_v34 = vpop.eup %2799  ;;  %v1946_v57 = vmul.f32 %v2798_v8, %v3896_v46  ;;  %2819 = vrcp.f32 %v1916_v17  ;;  %v1999_v4 = vmul.f32 %v1942_v60, %v3783_v10  ;;  %2029 = vst [vmem:[%s3865_s27 + $0x20] sm:$0xff] %v1997_v38  ;;  %v4008_v17 = vmul.f32 %v3949_v58, %v1864_v59  ;;  %v4197_v38 = vld [vmem:[#allocation19_spill] sm:$0xff]  ;;  %v4198_v59 = vld [vmem:[#allocation28_spill] sm:$0xff] }
 0x2a1   : > { %v2802_v36 = vpop.eup %2801  ;;  %v1948_v12 = vmul.f32 %v2800_v34, %v3899_v27  ;;  %2821 = vrcp.f32 %v1917_v44  ;;  %v2000_v5 = vmul.f32 %v1944_v55, %v3786_v3  ;;  %2030 = vst [vmem:[%s3865_s27 + $0x28] sm:$0xff] %v1998_v1  ;;  %v1924_v44 = vadd.f32 2.0, %v3978_v9  ;;  %v4199_v1 = vld [vmem:[#allocation20_spill] sm:$0xff] }
 0x2a2   : > { %v2804_v63 = vpop.eup %2803  ;;  %v1950_v46 = vmul.f32 %v2802_v36, %v3901_v35  ;;  %2823 = vrcp.f32 %v1918_v37  ;;  %v2001_v10 = vmul.f32 %v1946_v57, %v3789_v7  ;;  %2031 = vst [vmem:[%s3865_s27 + $0x30] sm:$0xff] %v1999_v4  ;;  %v4189_v7 = vld [vmem:[#allocation12_spill] sm:$0xff]  ;;  %v1927_v20 = vadd.f32 2.0, %v4002_v48  ;;  %v4200_v4 = vld [vmem:[#allocation21_spill] sm:$0xff] }
 0x2a3   : > { %v2806_v39 = vpop.eup %2805  ;;  %v1952_v27 = vmul.f32 %v2804_v63, %v3905_v53  ;;  %2825 = vrcp.f32 %v3957_v50  ;;  %v2002_v3 = vmul.f32 %v1948_v12, %v3792_v47  ;;  %2032 = vst [vmem:[%s3865_s27 + $0x38] sm:$0xff] %v2000_v5  ;;  %v4190_v47 = vld [vmem:[#allocation13_spill] sm:$0xff]  ;;  %v1928_v13 = vadd.f32 2.0, %v4008_v17  ;;  %v4202_v63 = vld [vmem:[#allocation22_spill] sm:$0xff] }
 0x2a4   : > { %v2808_v54 = vpop.eup %2807  ;;  %v1954_v35 = vmul.f32 %v2806_v39, %v3911_v11  ;;  %2827 = vrcp.f32 %v3964_v43  ;;  %v2003_v37 = vmul.f32 %v1950_v46, %v4189_v7  ;;  %2033 = vst [vmem:[%s3865_s27 + $0x40] sm:$0xff] %v2001_v10  ;;  %v4191_v43 = vld [vmem:[#allocation14_spill] sm:$0xff]  ;;  %v4201_v12 = vld [vmem:[#allocation29_spill] sm:$0xff] }
 0x2a5   : > { %v2810_v58 = vpop.eup %2809  ;;  %v1956_v53 = vmul.f32 %v2808_v54, %v3915_v40  ;;  %2829 = vrcp.f32 %v1921_v24  ;;  %v2004_v50 = vmul.f32 %v1952_v27, %v4190_v47  ;;  %2034 = vst [vmem:[%s3865_s27 + $0x48] sm:$0xff] %v2002_v3  ;;  %v4203_v27 = vld [vmem:[#allocation23_spill] sm:$0xff]  ;;  %v4206_v47 = vld [vmem:[#allocation26_spill] sm:$0xff] }
 0x2a6   : > { %v2812_v0 = vpop.eup %2811  ;;  %v1958_v11 = vmul.f32 %v2810_v58, %v3918_v31  ;;  %2831 = vrcp.f32 %v1922_v6  ;;  %v2005_v45 = vmul.f32 %v1954_v35, %v4191_v43  ;;  %2035 = vst [vmem:[%s3865_s27 + $0x50] sm:$0xff] %v2003_v37  ;;  %v4193_v31 = vld [vmem:[#allocation16_spill] sm:$0xff]  ;;  %v4196_v6 = vld [vmem:[#allocation27_spill] sm:$0xff]  ;;  %v4205_v58 = vld [vmem:[#allocation25_spill] sm:$0xff] }
 0x2a7   : > { %v2814_v15 = vpop.eup %2813  ;;  %v1960_v40 = vmul.f32 %v2812_v0, %v3921_v32  ;;  %2833 = vrcp.f32 %v1923_v14  ;;  %v2006_v24 = vmul.f32 %v1956_v53, %v4192_v42  ;;  %2036 = vst [vmem:[%s3865_s27 + $0x58] sm:$0xff] %v2004_v50 }
 0x2a8   : > { %v2816_v29 = vpop.eup %2815  ;;  %v1962_v22 = vmul.f32 %v2814_v15, %v3923_v52  ;;  %2835 = vrcp.f32 %v1924_v44  ;;  %v2007_v25 = vmul.f32 %v1958_v11, %v4193_v31  ;;  %2037 = vst [vmem:[%s3865_s27 + $0x60] sm:$0xff] %v2005_v45  ;;  %v4204_v44 = vld [vmem:[#allocation24_spill] sm:$0xff]  ;;  %v4208_v45 = vld [vmem:[#allocation7_spill] sm:$0xff] }
 0x2a9   : > { %v2818_v33 = vpop.eup %2817  ;;  %v1964_v56 = vmul.f32 %v2816_v29, %v3926_v49  ;;  %2837 = vrcp.f32 %v1925_v21  ;;  %v2008_v32 = vmul.f32 %v1960_v40, %v4194_v51  ;;  %2038 = vst [vmem:[%s3865_s27 + $0x68] sm:$0xff] %v2006_v24  ;;  %v4209_v40 = vld [vmem:[#allocation8_spill] sm:$0xff]  ;;  %v4210_v24 = vld [vmem:[#allocation9_spill] sm:$0xff]  ;;  %v4211_v29 = vld [vmem:[#allocation10_spill] sm:$0xff] }
 0x2aa   : > { %v2820_v19 = vpop.eup %2819  ;;  %v1966_v61 = vmul.f32 %v2818_v33, %v3928_v62  ;;  %2839 = vrcp.f32 %v1927_v20  ;;  %v2009_v52 = vmul.f32 %v1962_v22, %v4195_v28  ;;  %2039 = vst [vmem:[%s3865_s27 + $0x70] sm:$0xff] %v2007_v25  ;;  %v4207_v20 = vld [vmem:[#allocation6_spill] sm:$0xff]  ;;  %v4212_v31 = vld [vmem:[#allocation11_spill] sm:$0xff] }
 0x2ab   : > { %v2822_v30 = vpop.eup %2821  ;;  %v1968_v60 = vmul.f32 %v2820_v19, %v4196_v6  ;;  %2841 = vrcp.f32 %v1928_v13  ;;  %v2010_v49 = vmul.f32 %v1964_v56, %v4197_v38  ;;  %2040 = vst [vmem:[%s3865_s27 + $0x78] sm:$0xff] %v2008_v32 }
 0x2ac   : > { %v2824_v8 = vpop.eup %2823  ;;  %v1970_v55 = vmul.f32 %v2822_v30, %v4198_v59  ;;  %v2011_v34 = vmul.f32 %v1966_v61, %v4199_v1  ;;  %2041 = vst [vmem:[%s3865_s27 + $0x80] sm:$0xff] %v2009_v52 }
 0x2ad   : > { %v2826_v62 = vpop.eup %2825  ;;  %v1972_v57 = vmul.f32 %v2824_v8, %v3935_v16  ;;  %v2012_v36 = vmul.f32 %v1968_v60, %v4200_v4  ;;  %2042 = vst [vmem:[%s3865_s27 + $0x88] sm:$0xff] %v2010_v49 }
 0x2ae   : > { %v2828_v14 = vpop.eup %2827  ;;  %v1974_v5 = vmul.f32 %v2826_v62, %v4201_v12  ;;  %v2013_v46 = vmul.f32 %v1970_v55, %v4202_v63  ;;  %2043 = vst [vmem:[%s3865_s27 + $0x90] sm:$0xff] %v2011_v34 }
 0x2af   : > { %v2830_v10 = vpop.eup %2829  ;;  %v1976_v39 = vmul.f32 %v2828_v14, %v3945_v41  ;;  %v2014_v3 = vmul.f32 %v1972_v57, %v4203_v27  ;;  %2044 = vst [vmem:[%s3865_s27 + $0x98] sm:$0xff] %v2012_v36 }
 0x2b0   : > { %v2832_v54 = vpop.eup %2831  ;;  %v1978_v16 = vmul.f32 %v2830_v10, %v3953_v2  ;;  %v2015_v35 = vmul.f32 %v1974_v5, %v4204_v44  ;;  %2045 = vst [vmem:[%s3865_s27 + $0xa0] sm:$0xff] %v2013_v46 }
 0x2b1   : > { %v2834_v7 = vpop.eup %2833  ;;  %v1980_v37 = vmul.f32 %v2832_v54, %v3959_v18  ;;  %v2016_v21 = vmul.f32 %v1976_v39, %v4205_v58  ;;  %2046 = vst [vmem:[%s3865_s27 + $0xa8] sm:$0xff] %v2014_v3 }
 0x2b2   : > { %v2836_v53 = vpop.eup %2835  ;;  %v1982_v41 = vmul.f32 %v2834_v7, %v3967_v26  ;;  %v2017_v50 = vmul.f32 %v1978_v16, %v4206_v47  ;;  %2047 = vst [vmem:[%s3865_s27 + $0xb0] sm:$0xff] %v2015_v35 }
 0x2b3   : > { %v2838_v2 = vpop.eup %2837  ;;  %v1984_v0 = vmul.f32 %v2836_v53, %v3978_v9  ;;  %v2018_v11 = vmul.f32 %v1980_v37, %v4207_v20  ;;  %2048 = vst [vmem:[%s3865_s27 + $0xb8] sm:$0xff] %v2016_v21 }
 0x2b4   : > { %v2840_v18 = vpop.eup %2839  ;;  %v1986_v43 = vmul.f32 %v2838_v2, %v3992_v23  ;;  %v2019_v15 = vmul.f32 %v1982_v41, %v4208_v45  ;;  %2049 = vst [vmem:[%s3865_s27 + $0xc0] sm:$0xff] %v2017_v50 }
 0x2b5   : > { %v2842_v26 = vpop.eup %2841  ;;  %v1990_v13 = vmul.f32 %v2840_v18, %v4002_v48  ;;  %v2020_v9 = vmul.f32 %v1984_v0, %v4209_v40  ;;  %2050 = vst [vmem:[%s3865_s27 + $0xc8] sm:$0xff] %v2018_v11 }
 0x2b6   : > { %v1992_v42 = vmul.f32 %v2842_v26, %v4008_v17  ;;  %v2021_v23 = vmul.f32 %v1986_v43, %v4210_v24  ;;  %2051 = vst [vmem:[%s3865_s27 + $0xd0] sm:$0xff] %v2019_v15 }
 0x2b7   : > { %v2023_v22 = vmul.f32 %v1990_v13, %v4211_v29  ;;  %2052 = vst [vmem:[%s3865_s27 + $0xd8] sm:$0xff] %v2020_v9 }
 0x2b8   : > { %v2024_v48 = vmul.f32 %v1992_v42, %v4212_v31  ;;  %2053 = vst [vmem:[%s3865_s27 + $0xe0] sm:$0xff] %v2021_v23 }
 0x2b9   : > { %2055 = vst [vmem:[%s3865_s27 + $0xf0] sm:$0xff] %v2023_v22 }
 0x2ba   : > { %2056 = vst [vmem:[%s3865_s27 + $0xf8] sm:$0xff] %v2024_v48 }
 0x2bb   : > { %2856 = shalt.err (!%p2853_p3)
}
 0x2bc   : > { %s2857_s11 = scalar_lea.hbm %s4083_s5, 4096  ;;  %s2861_s20 = scalar_lea.hbm %s4138_s3, 8192 }
 0x2bd   : > { %p2858_p4 = scmp.ne.s32.totalorder %s4083_s5, %s2857_s11  ;;  %p2862_p9 = scmp.lt.u32.totalorder %s4083_s5, %s4138_s3 }
 0x2be   : > { %p2863_p10 = scmp.lt.u32.totalorder %s2861_s20, %s2857_s11  ;;  %p2865_p12 = scmp.lt.u32.totalorder %s2857_s11, %s4083_s5 }
 0x2bf   : > { %p2859_p7 = pnand %p2858_p4, %p2970_p5 }
 0x2c0   : > { %p2864_p11 = por %p2863_p10, %p2862_p9 }
 0x2c1   : > { %p2860_p8 = pneg %p2859_p7 }
 0x2c2   : > { %p2866_p13 = por %p2865_p12, %p2864_p11 }
 0x2c4   : > { %p2867_p0 = pnand %p2866_p13, %p2860_p8 }
 0x2c6   : > { %2870 = shalt.err (!%p2867_p0)
}
 0x2c7   : > { %s2911_s26 = smov 128  }
 0x2c8   : > { %2507 = dma.vmem_to_hbm [thread:$0]  (%p2970_p5), %s4087_s29, 4096, %s4083_s5, %s4093_s6, %s2911_s26, %s2911_s26, %s2908_s4  }
 0x2c9 PF: > { %p2513_p1 = scmp.ge.s32.totalorder %s2905_s15, 2  ;;  %s2086_s27 = sand.u32 1, %s2893_s12  }
 0x2ca   : > { %s2087_s28 = scalar_lea.sflag [#allocation4], %s2086_s27 }
 0x2cb   : > { %p2510_p2 = pnand %p2513_p1, %p2974_p6 }
 0x2cd   : > { %2888 = dma.done.wait (!%p2510_p2), %s2087_s28, 4096  }
 0x2ce   : > { %2890 = vsyncadd (!%p2510_p2), %s2087_s28, 4294963200  ;;  %p13_p3 = scmp.ge.s32.totalorder %s2957_s18, 4   ;;  %s4213_s12 = smov %s2897_s13 }
 0x2cf   : > { %s4214_s13 = smov %s2901_s14  ;;  %s4215_s14 = smov %s2968_s21 }
 0x2d0   : > { %s4216_s15 = smov %s2957_s18  ;;  %15 = sbr.rel (!%p13_p3) target bundleno = 3 (0x3), region = 71 }
 0x2d7   :  { %2092 = vsyncpa [#allocation4], 1 }
 0x2d8   :  { %2094 = vsyncpa [#allocation4 + $0x1], 1 }

</bundles_post_ra>
